<compile_context>
chip_gen: v6e
topology: v6e:2x2x1
jax: 0.10.0
libtpu: 0.0.40
codegen_flags: <defaults>
</compile_context>

<pallas_src>
import jax
import jax.numpy as jnp
from jax.experimental import pallas as pl
from jax.experimental.pallas import tpu as pltpu

# Model dims (from the PyTorch module)
INPUT_DIM = 1024
HIDDEN_DIM1 = 512
HIDDEN_DIM2 = 259
HIDDEN_DIM3 = 128
NUM_CLASSES = 4

# Lane-aligned padded dims
HIDDEN_DIM2_PAD = 384   # 3 * 128 (exactly fills 128-wide MXU passes on v5e too)
OUT_PAD = 128           # lane-dense output slab; wrapper slices [:, :4]


def _round_up(n, m):
    return (n + m - 1) // m * m


def mlp_kernel(x_ref, w1_ref, b1_ref, w2_ref, b2_ref, w3_ref, b3_ref,
               w4_ref, b4_ref, out_ref):
    # fc1 + ReLU (dropout == identity in eval).  The f32 input is cast to bf16
    # in-kernel (no separate wrapper cast pass over HBM); dot operands are
    # bf16, accumulation + elementwise math in f32.
    h = jnp.dot(x_ref[...].astype(jnp.bfloat16), w1_ref[...],
                preferred_element_type=jnp.float32)
    h = jnp.maximum(h + b1_ref[...], 0.0)
    # fc2 + ReLU (padded to 384 lanes)
    h = jnp.dot(h.astype(jnp.bfloat16), w2_ref[...],
                preferred_element_type=jnp.float32)
    h = jnp.maximum(h + b2_ref[...], 0.0)
    # fc3 + ReLU
    h = jnp.dot(h.astype(jnp.bfloat16), w3_ref[...],
                preferred_element_type=jnp.float32)
    h = jnp.maximum(h + b3_ref[...], 0.0)
    # fc4 (logits, padded to 128 lanes, no activation); store bf16 lane-dense.
    out = jnp.dot(h.astype(jnp.bfloat16), w4_ref[...],
                  preferred_element_type=jnp.float32) + b4_ref[...]
    out_ref[...] = out.astype(out_ref.dtype)


def prepare_padded_params(params):
    """Zero-pad ragged dims (259->384, 4->128); cast weights bf16, biases f32.

    Call ONCE at parameter-load time (hoisted out of the per-call forward
    path).  Padding is exact: padded b2/b4 entries are 0, so padded activation
    columns are ReLU(0)=0 and multiply into zero rows of padded w3; padded
    logit columns are sliced off by the wrapper.
    """
    w1 = params["w1"].astype(jnp.bfloat16)
    b1 = params["b1"].astype(jnp.float32)
    w2 = jnp.pad(params["w2"],
                 ((0, 0), (0, HIDDEN_DIM2_PAD - HIDDEN_DIM2))).astype(jnp.bfloat16)
    b2 = jnp.pad(params["b2"],
                 ((0, 0), (0, HIDDEN_DIM2_PAD - HIDDEN_DIM2))).astype(jnp.float32)
    w3 = jnp.pad(params["w3"],
                 ((0, HIDDEN_DIM2_PAD - HIDDEN_DIM2), (0, 0))).astype(jnp.bfloat16)
    b3 = params["b3"].astype(jnp.float32)
    w4 = jnp.pad(params["w4"],
                 ((0, 0), (0, OUT_PAD - NUM_CLASSES))).astype(jnp.bfloat16)
    b4 = jnp.pad(params["b4"],
                 ((0, 0), (0, OUT_PAD - NUM_CLASSES))).astype(jnp.float32)
    return w1, b1, w2, b2, w3, b3, w4, b4


def _choose_batch_tiling(B, target_tile):
    """Pick (B_pad, tile_b): pad batch only to the 16-row packing granularity
    and choose a tile (multiple of 16) that divides it exactly."""
    B_pad = _round_up(max(B, 16), 16)
    target = min(target_tile, B_pad)
    # Guarantee >= 2 grid steps when there is enough work, so the "parallel"
    # batch axis shards across v7x's two TensorCores (no-op on v5e/v6e).
    if B_pad >= 512:
        target = min(target, _round_up(pl.cdiv(B_pad, 2), 16))
    target = max(16, target - target % 16)
    tile = target
    while B_pad % tile != 0:
        tile -= 16
    return B_pad, tile


def protein_classifier_forward(x, params, tile_b=None):
    """x: (B, INPUT_DIM) float32. `params` is the tuple from
    prepare_padded_params (preferred; prepare once) or the raw dict.
    Returns (B, NUM_CLASSES) float32 logits."""
    if isinstance(params, dict):
        params = prepare_padded_params(params)  # prefer hoisting this out
    w1, b1, w2, b2, w3, b3, w4, b4 = params

    B = x.shape[0]
    # Default tile: up to 1024 rows -> ~16 MiB/step working set, comfortably
    # inside the 48 MiB scoped VMEM limit on every generation (incl. v7x 64 MiB).
    B_pad, tile = _choose_batch_tiling(B, 1024 if tile_b is None else tile_b)
    x_p = x if B_pad == B else jnp.pad(x, ((0, B_pad - B), (0, 0)))

    grid = (B_pad // tile,)

    def resident(shape):
        # Full-shape block, same block index every grid step -> stays in VMEM.
        # (Could be single-buffered via pipeline_mode if VMEM ever gets tight.)
        return pl.BlockSpec(shape, lambda i: (0, 0))

    flops = 2 * B_pad * (INPUT_DIM * HIDDEN_DIM1
                         + HIDDEN_DIM1 * HIDDEN_DIM2_PAD
                         + HIDDEN_DIM2_PAD * HIDDEN_DIM3
                         + HIDDEN_DIM3 * OUT_PAD)
    weight_bytes = 2 * (INPUT_DIM * HIDDEN_DIM1 + HIDDEN_DIM1 * HIDDEN_DIM2_PAD
                        + HIDDEN_DIM2_PAD * HIDDEN_DIM3 + HIDDEN_DIM3 * OUT_PAD)
    bias_bytes = 4 * (HIDDEN_DIM1 + HIDDEN_DIM2_PAD + HIDDEN_DIM3 + OUT_PAD)
    bytes_accessed = (B_pad * INPUT_DIM * 4      # f32 input read
                      + weight_bytes + bias_bytes
                      + B_pad * OUT_PAD * 2)     # bf16 logits write

    out_padded = pl.pallas_call(
        mlp_kernel,
        out_shape=jax.ShapeDtypeStruct((B_pad, OUT_PAD), jnp.bfloat16),
        grid=grid,
        in_specs=[
            pl.BlockSpec((tile, INPUT_DIM), lambda i: (i, 0)),  # x: pipelined per tile
            resident((INPUT_DIM, HIDDEN_DIM1)),
            resident((1, HIDDEN_DIM1)),
            resident((HIDDEN_DIM1, HIDDEN_DIM2_PAD)),
            resident((1, HIDDEN_DIM2_PAD)),
            resident((HIDDEN_DIM2_PAD, HIDDEN_DIM3)),
            resident((1, HIDDEN_DIM3)),
            resident((HIDDEN_DIM3, OUT_PAD)),
            resident((1, OUT_PAD)),
        ],
        out_specs=pl.BlockSpec((tile, OUT_PAD), lambda i: (i, 0)),
        compiler_params=pltpu.CompilerParams(
            dimension_semantics=("parallel",),
            vmem_limit_bytes=48 << 20),
        cost_estimate=pl.CostEstimate(
            flops=flops, transcendentals=0, bytes_accessed=bytes_accessed),
    )(x_p, w1, b1, w2, b2, w3, b3, w4, b4)

    return out_padded[:B, :NUM_CLASSES].astype(jnp.float32)


def init_params(key):
    """Deterministic init matching nn.Linear shapes.
    PyTorch stores W as (out, in); we keep (in, out) so the kernel does x @ W."""
    dims = [(INPUT_DIM, HIDDEN_DIM1),
            (HIDDEN_DIM1, HIDDEN_DIM2),
            (HIDDEN_DIM2, HIDDEN_DIM3),
            (HIDDEN_DIM3, NUM_CLASSES)]
    params = {}
    for i, (din, dout) in enumerate(dims, start=1):
        key, kw, kb = jax.random.split(key, 3)
        bound = 1.0 / jnp.sqrt(din)  # torch nn.Linear default uniform bound
        params[f"w{i}"] = jax.random.uniform(
            kw, (din, dout), jnp.float32, minval=-bound, maxval=bound)
        params[f"b{i}"] = jax.random.uniform(
            kb, (1, dout), jnp.float32, minval=-bound, maxval=bound)
    return params


def reference_forward_bf16(x, prepared):
    """Pure-JAX reference with the same bf16-operand / f32-accumulate /
    bf16-output numerics as the kernel."""
    w1, b1, w2, b2, w3, b3, w4, b4 = prepared
    h = jnp.dot(x.astype(jnp.bfloat16), w1, preferred_element_type=jnp.float32)
    h = jnp.maximum(h + b1, 0.0)
    h = jnp.dot(h.astype(jnp.bfloat16), w2, preferred_element_type=jnp.float32)
    h = jnp.maximum(h + b2, 0.0)
    h = jnp.dot(h.astype(jnp.bfloat16), w3, preferred_element_type=jnp.float32)
    h = jnp.maximum(h + b3, 0.0)
    out = jnp.dot(h.astype(jnp.bfloat16), w4, preferred_element_type=jnp.float32) + b4
    out = out.astype(jnp.bfloat16).astype(jnp.float32)   # match kernel's bf16 store
    return out[:, :NUM_CLASSES]


def reference_forward_f32(x, params):
    h = jnp.maximum(x @ params["w1"] + params["b1"], 0.0)
    h = jnp.maximum(h @ params["w2"] + params["b2"], 0.0)
    h = jnp.maximum(h @ params["w3"] + params["b3"], 0.0)
    return h @ params["w4"] + params["b4"]


if __name__ == "__main__":
    key = jax.random.PRNGKey(0)
    key, kx, kp = jax.random.split(key, 3)
    B = 32
    x = jax.random.normal(kx, (B, INPUT_DIM), jnp.float32)
    params = init_params(kp)
    prepared = prepare_padded_params(params)   # hoisted out of the forward path

    # Default tiling (single batch tile at this small B).
    out = protein_classifier_forward(x, prepared)
    out = jax.block_until_ready(out)
    assert out.shape == (B, NUM_CLASSES)
    assert out.dtype == jnp.float32

    # Small tile to exercise the multi-step pipelined batch grid (grid of 2).
    out_tiled = protein_classifier_forward(x, prepared, tile_b=16)
    out_tiled = jax.block_until_ready(out_tiled)
    assert jnp.allclose(out, out_tiled, atol=1e-5, rtol=1e-5), \
        float(jnp.max(jnp.abs(out - out_tiled)))

    # Tight check vs. a reference using identical bf16-operand/output numerics.
    ref_bf16 = reference_forward_bf16(x, prepared)
    assert jnp.allclose(out, ref_bf16, atol=2e-2, rtol=2e-2), \
        float(jnp.max(jnp.abs(out - ref_bf16)))

    # Coarse sanity check vs. the pure-f32 reference (bf16 quantization error).
    ref_f32 = reference_forward_f32(x, params)
    assert jnp.allclose(out, ref_f32, atol=1e-1, rtol=1e-1), \
        float(jnp.max(jnp.abs(out - ref_f32)))

    print("KERNEL_OK")
</pallas_src>

<mosaic_0001>
module attributes {stable_mosaic.version = 11 : i64} {
  func.func @mlp_kernel(%arg0: i32, %arg1: memref<32x1024xf32, #tpu.memory_space<vmem>>, %arg2: memref<1024x512xbf16, #tpu.memory_space<vmem>>, %arg3: memref<1x512xf32, #tpu.memory_space<vmem>>, %arg4: memref<512x384xbf16, #tpu.memory_space<vmem>>, %arg5: memref<1x384xf32, #tpu.memory_space<vmem>>, %arg6: memref<384x128xbf16, #tpu.memory_space<vmem>>, %arg7: memref<1x128xf32, #tpu.memory_space<vmem>>, %arg8: memref<128x128xbf16, #tpu.memory_space<vmem>>, %arg9: memref<1x128xf32, #tpu.memory_space<vmem>>, %arg10: memref<32x128xbf16, #tpu.memory_space<vmem>>) attributes {dimension_semantics = [#tpu.dimension_semantics<parallel>], iteration_bounds = array<i64: 1>, scalar_prefetch = 0 : i64, scratch_operands = 0 : i64, tpu.core_type = #tpu.core_type<tc>, window_params = [{transform_indices = @transform_0, window_bounds = array<i64: 32, 1024>}, {pipeline_mode = #tpu.pipeline_mode<synchronous>, transform_indices = @transform_1, window_bounds = array<i64: 1024, 512>}, {pipeline_mode = #tpu.pipeline_mode<synchronous>, transform_indices = @transform_2, window_bounds = array<i64: 1, 512>}, {pipeline_mode = #tpu.pipeline_mode<synchronous>, transform_indices = @transform_3, window_bounds = array<i64: 512, 384>}, {pipeline_mode = #tpu.pipeline_mode<synchronous>, transform_indices = @transform_4, window_bounds = array<i64: 1, 384>}, {pipeline_mode = #tpu.pipeline_mode<synchronous>, transform_indices = @transform_5, window_bounds = array<i64: 384, 128>}, {pipeline_mode = #tpu.pipeline_mode<synchronous>, transform_indices = @transform_6, window_bounds = array<i64: 1, 128>}, {pipeline_mode = #tpu.pipeline_mode<synchronous>, transform_indices = @transform_7, window_bounds = array<i64: 128, 128>}, {pipeline_mode = #tpu.pipeline_mode<synchronous>, transform_indices = @transform_8, window_bounds = array<i64: 1, 128>}, {transform_indices = @transform_9, window_bounds = array<i64: 32, 128>}]} {
    %c0 = arith.constant 0 : index
    %c0_0 = arith.constant 0 : index
    %0 = vector.load %arg1[%c0, %c0_0] : memref<32x1024xf32, #tpu.memory_space<vmem>>, vector<32x1024xf32>
    %1 = arith.truncf %0 : vector<32x1024xf32> to vector<32x1024xbf16>
    %c0_1 = arith.constant 0 : index
    %c0_2 = arith.constant 0 : index
    %2 = vector.load %arg2[%c0_1, %c0_2] : memref<1024x512xbf16, #tpu.memory_space<vmem>>, vector<1024x512xbf16>
    %cst = arith.constant dense<0.000000e+00> : vector<32x512xf32>
    %3 = tpu.matmul %1, %2, %cst {dimension_numbers = #tpu.dot_dimension_numbers<[1], [0], [0], [1], [0, 0, 1, 1], [], []>} : vector<32x1024xbf16>, vector<1024x512xbf16>, vector<32x512xf32> -> vector<32x512xf32>
    %c0_3 = arith.constant 0 : index
    %c0_4 = arith.constant 0 : index
    %4 = vector.load %arg3[%c0_3, %c0_4] : memref<1x512xf32, #tpu.memory_space<vmem>>, vector<1x512xf32>
    %5 = vector.broadcast %4 : vector<1x512xf32> to vector<32x512xf32>
    %6 = arith.addf %3, %5 : vector<32x512xf32>
    %cst_5 = arith.constant 0.000000e+00 : f32
    %7 = vector.broadcast %cst_5 : f32 to vector<32x512xf32>
    %8 = arith.maximumf %6, %7 : vector<32x512xf32>
    %9 = arith.truncf %8 : vector<32x512xf32> to vector<32x512xbf16>
    %c0_6 = arith.constant 0 : index
    %c0_7 = arith.constant 0 : index
    %10 = vector.load %arg4[%c0_6, %c0_7] : memref<512x384xbf16, #tpu.memory_space<vmem>>, vector<512x384xbf16>
    %cst_8 = arith.constant dense<0.000000e+00> : vector<32x384xf32>
    %11 = tpu.matmul %9, %10, %cst_8 {dimension_numbers = #tpu.dot_dimension_numbers<[1], [0], [0], [1], [0, 0, 1, 1], [], []>} : vector<32x512xbf16>, vector<512x384xbf16>, vector<32x384xf32> -> vector<32x384xf32>
    %c0_9 = arith.constant 0 : index
    %c0_10 = arith.constant 0 : index
    %12 = vector.load %arg5[%c0_9, %c0_10] : memref<1x384xf32, #tpu.memory_space<vmem>>, vector<1x384xf32>
    %13 = vector.broadcast %12 : vector<1x384xf32> to vector<32x384xf32>
    %14 = arith.addf %11, %13 : vector<32x384xf32>
    %cst_11 = arith.constant 0.000000e+00 : f32
    %15 = vector.broadcast %cst_11 : f32 to vector<32x384xf32>
    %16 = arith.maximumf %14, %15 : vector<32x384xf32>
    %17 = arith.truncf %16 : vector<32x384xf32> to vector<32x384xbf16>
    %c0_12 = arith.constant 0 : index
    %c0_13 = arith.constant 0 : index
    %18 = vector.load %arg6[%c0_12, %c0_13] : memref<384x128xbf16, #tpu.memory_space<vmem>>, vector<384x128xbf16>
    %cst_14 = arith.constant dense<0.000000e+00> : vector<32x128xf32>
    %19 = tpu.matmul %17, %18, %cst_14 {dimension_numbers = #tpu.dot_dimension_numbers<[1], [0], [0], [1], [0, 0, 1, 1], [], []>} : vector<32x384xbf16>, vector<384x128xbf16>, vector<32x128xf32> -> vector<32x128xf32>
    %c0_15 = arith.constant 0 : index
    %c0_16 = arith.constant 0 : index
    %20 = vector.load %arg7[%c0_15, %c0_16] : memref<1x128xf32, #tpu.memory_space<vmem>>, vector<1x128xf32>
    %21 = vector.broadcast %20 : vector<1x128xf32> to vector<32x128xf32>
    %22 = arith.addf %19, %21 : vector<32x128xf32>
    %cst_17 = arith.constant 0.000000e+00 : f32
    %23 = vector.broadcast %cst_17 : f32 to vector<32x128xf32>
    %24 = arith.maximumf %22, %23 : vector<32x128xf32>
    %25 = arith.truncf %24 : vector<32x128xf32> to vector<32x128xbf16>
    %c0_18 = arith.constant 0 : index
    %c0_19 = arith.constant 0 : index
    %26 = vector.load %arg8[%c0_18, %c0_19] : memref<128x128xbf16, #tpu.memory_space<vmem>>, vector<128x128xbf16>
    %cst_20 = arith.constant dense<0.000000e+00> : vector<32x128xf32>
    %27 = tpu.matmul %25, %26, %cst_20 {dimension_numbers = #tpu.dot_dimension_numbers<[1], [0], [0], [1], [0, 0, 1, 1], [], []>} : vector<32x128xbf16>, vector<128x128xbf16>, vector<32x128xf32> -> vector<32x128xf32>
    %c0_21 = arith.constant 0 : index
    %c0_22 = arith.constant 0 : index
    %28 = vector.load %arg9[%c0_21, %c0_22] : memref<1x128xf32, #tpu.memory_space<vmem>>, vector<1x128xf32>
    %29 = vector.broadcast %28 : vector<1x128xf32> to vector<32x128xf32>
    %30 = arith.addf %27, %29 : vector<32x128xf32>
    %31 = arith.truncf %30 : vector<32x128xf32> to vector<32x128xbf16>
    %c0_23 = arith.constant 0 : index
    %c0_24 = arith.constant 0 : index
    %32 = vector.load %arg10[%c0_23, %c0_24] : memref<32x128xbf16, #tpu.memory_space<vmem>>, vector<32x128xbf16>
    tpu.vector_store %arg10[%c0_23, %c0_24], %31 {strides = array<i32>} : memref<32x128xbf16, #tpu.memory_space<vmem>>, vector<32x128xbf16>,
    return
  }
  func.func @transform_0(%arg0: i32) -> (i32, i32) {
    %c0_i32 = arith.constant 0 : i32
    %c0_i32_0 = arith.constant 0 : i32
    return %arg0, %c0_i32 : i32, i32
  }
  func.func @transform_1(%arg0: i32) -> (i32, i32) {
    %c0_i32 = arith.constant 0 : i32
    %c0_i32_0 = arith.constant 0 : i32
    %c0_i32_1 = arith.constant 0 : i32
    return %c0_i32, %c0_i32_0 : i32, i32
  }
  func.func @transform_2(%arg0: i32) -> (i32, i32) {
    %c0_i32 = arith.constant 0 : i32
    %c0_i32_0 = arith.constant 0 : i32
    %c0_i32_1 = arith.constant 0 : i32
    return %c0_i32, %c0_i32_0 : i32, i32
  }
  func.func @transform_3(%arg0: i32) -> (i32, i32) {
    %c0_i32 = arith.constant 0 : i32
    %c0_i32_0 = arith.constant 0 : i32
    %c0_i32_1 = arith.constant 0 : i32
    return %c0_i32, %c0_i32_0 : i32, i32
  }
  func.func @transform_4(%arg0: i32) -> (i32, i32) {
    %c0_i32 = arith.constant 0 : i32
    %c0_i32_0 = arith.constant 0 : i32
    %c0_i32_1 = arith.constant 0 : i32
    return %c0_i32, %c0_i32_0 : i32, i32
  }
  func.func @transform_5(%arg0: i32) -> (i32, i32) {
    %c0_i32 = arith.constant 0 : i32
    %c0_i32_0 = arith.constant 0 : i32
    %c0_i32_1 = arith.constant 0 : i32
    return %c0_i32, %c0_i32_0 : i32, i32
  }
  func.func @transform_6(%arg0: i32) -> (i32, i32) {
    %c0_i32 = arith.constant 0 : i32
    %c0_i32_0 = arith.constant 0 : i32
    %c0_i32_1 = arith.constant 0 : i32
    return %c0_i32, %c0_i32_0 : i32, i32
  }
  func.func @transform_7(%arg0: i32) -> (i32, i32) {
    %c0_i32 = arith.constant 0 : i32
    %c0_i32_0 = arith.constant 0 : i32
    %c0_i32_1 = arith.constant 0 : i32
    return %c0_i32, %c0_i32_0 : i32, i32
  }
  func.func @transform_8(%arg0: i32) -> (i32, i32) {
    %c0_i32 = arith.constant 0 : i32
    %c0_i32_0 = arith.constant 0 : i32
    %c0_i32_1 = arith.constant 0 : i32
    return %c0_i32, %c0_i32_0 : i32, i32
  }
  func.func @transform_9(%arg0: i32) -> (i32, i32) {
    %c0_i32 = arith.constant 0 : i32
    %c0_i32_0 = arith.constant 0 : i32
    return %arg0, %c0_i32 : i32, i32
  }
}

</mosaic_0001>

<bundles_post_ra>
// kernel: tpu_custom_call.1
= control target key start
LH: loop header
LB: loop body
LE: loop exit
PB: predicated region body
PF: predicated region fallthrough
CT: control target
= control target key end

     0   :  { %14 = vsyncpa [#allocation3], 0  ;;  %s4974_s0 = inlined_call_operand.hbm [shape: f32[32,1024], index: 0, kind: input, shape index: {}]   ;;  %s4975_s1 = inlined_call_operand.hbm [shape: bf16[1024,512], index: 1, kind: input, shape index: {}]   ;;  %s4976_s2 = inlined_call_operand.hbm [shape: f32[1,512], index: 2, kind: input, shape index: {}]   ;;  %s4977_s3 = inlined_call_operand.hbm [shape: bf16[512,384], index: 3, kind: input, shape index: {}]   ;;  %s4978_s4 = inlined_call_operand.vmem [shape: f32[1,384], index: 4, kind: input, shape index: {}]   ;;  %s4979_s5 = inlined_call_operand.hbm [shape: bf16[384,128], index: 5, kind: input, shape index: {}]   ;;  %s4980_s6 = inlined_call_operand.vmem [shape: f32[1,128], index: 6, kind: input, shape index: {}]   ;;  %s4981_s7 = inlined_call_operand.hbm [shape: bf16[128,128], index: 7, kind: input, shape index: {}]   ;;  %s4982_s8 = inlined_call_operand.vmem [shape: f32[1,128], index: 8, kind: input, shape index: {}]   ;;  %s4983_s9 = inlined_call_operand.hbm [shape: bf16[32,128], index: 9, kind: output, shape index: {}]  }
   0x1   :  { %15 = vsyncpa [#allocation6], 0 }
   0x2   :  { %16 = vsyncpa [#allocation9], 0 }
   0x3   :  { %17 = vsyncpa [#allocation12], 0 }
   0x4   :  { %18 = vsyncpa [#allocation4], 0  ;;  %s4767_s30 = smov [#allocation5]  }
   0x5   :  { %s36_s10 = sshll.u32 %s4767_s30, 4  ;;  %s37_s10 = int_to_ptr.vmem [resolvable:$true] %s36_s10 }
   0x6   :  { %s4625_s11 = scalar_lea.vmem %s37_s10, 32768  ;;  %p4630_p1 = scmp.lt.s32.totalorder %s37_s10, %s37_s10 }
   0x7   :  { %p4626_p0 = scmp.ne.s32.totalorder %s37_s10, %s4625_s11  ;;  %p4631_p2 = scmp.lt.s32.totalorder %s4625_s11, %s4625_s11 }
   0x9   :  { %p4632_p3 = por %p4631_p2, %p4630_p1 }
   0xb   :  { %p4633_p4 = pnand %p4632_p3, %p4626_p0 }
   0xd   :  { %4636 = shalt.err (!%p4633_p4)
}
   0xe   :  { %s4768_s12 = smov 256   ;;  %s4769_s13 = smov 16  }
   0xf   :  { %42 = dma.hbm_to_vmem [thread:$0]  %s4975_s1, 32768, %s37_s10, [#allocation6], %s4768_s12, %s4768_s12, %s4769_s13  }
  0x10   :  { %s4770_s16 = smov [#allocation8]  }
  0x11   :  { %s58_s17 = sshll.u32 %s4770_s16, 4  ;;  %s59_s17 = int_to_ptr.vmem [resolvable:$true] %s58_s17 }
  0x12   :  { %s4645_s18 = scalar_lea.vmem %s59_s17, 12288  ;;  %p4650_p6 = scmp.lt.s32.totalorder %s59_s17, %s59_s17 }
  0x13   :  { %p4646_p5 = scmp.ne.s32.totalorder %s59_s17, %s4645_s18  ;;  %p4651_p7 = scmp.lt.s32.totalorder %s4645_s18, %s4645_s18 }
  0x15   :  { %p4652_p8 = por %p4651_p7, %p4650_p6 }
  0x17   :  { %p4653_p9 = pnand %p4652_p8, %p4646_p5 }
  0x19   :  { %4656 = shalt.err (!%p4653_p9)
}
  0x1a   :  { %s4771_s19 = smov 192   ;;  %s4772_s20 = smov 12  }
  0x1b   :  { %64 = dma.hbm_to_vmem [thread:$0]  %s4977_s3, 12288, %s59_s17, [#allocation9], %s4771_s19, %s4771_s19, %s4772_s20  }
  0x1c   :  { %s4773_s23 = smov [#allocation2]  }
  0x1d   :  { %s24_s24 = sshll.u32 %s4773_s23, 4  ;;  %s25_s24 = int_to_ptr.vmem [resolvable:$true] %s24_s24 }
  0x1e   :  { %s4665_s1 = scalar_lea.vmem %s25_s24, 4096  ;;  %p4670_p11 = scmp.lt.s32.totalorder %s25_s24, %s25_s24 }
  0x1f   :  { %p4666_p10 = scmp.ne.s32.totalorder %s25_s24, %s4665_s1  ;;  %p4671_p12 = scmp.lt.s32.totalorder %s4665_s1, %s4665_s1 }
  0x21   :  { %p4672_p13 = por %p4671_p12, %p4670_p11 }
  0x23   :  { %p4673_p0 = pnand %p4672_p13, %p4666_p10 }
  0x25   :  { %4676 = shalt.err (!%p4673_p0)
}
  0x26   :  { %s4774_s25 = smov 1024   ;;  %s4775_s26 = smov 64  }
  0x27   :  { %30 = dma.hbm_to_vmem [thread:$0]  %s4974_s0, 4096, %s25_s24, [#allocation3], %s4774_s25, %s4774_s25, %s4775_s26  }
  0x28   :  { %s4776_s29 = smov [#allocation7]   ;;  %s4777_s3 = smov [#allocation10]  }
  0x29   :  { %s49_s30 = sshll.u32 %s4776_s29, 4  ;;  %s72_s10 = sshll.u32 %s4777_s3, 4  ;;  %s50_s30 = int_to_ptr.vmem [resolvable:$true] %s49_s30  ;;  %s73_s10 = int_to_ptr.vmem [resolvable:$true] %s72_s10 }
  0x2a   :  { %s4685_s11 = scalar_lea.vmem %s50_s30, 64  ;;  %p4690_p2 = scmp.lt.s32.totalorder %s50_s30, %s50_s30 }
  0x2b   :  { %p4686_p1 = scmp.ne.s32.totalorder %s50_s30, %s4685_s11  ;;  %p4691_p3 = scmp.lt.s32.totalorder %s4685_s11, %s4685_s11 }
  0x2d   :  { %p4692_p4 = por %p4691_p3, %p4690_p2 }
  0x2f   :  { %p4693_p5 = pnand %p4692_p4, %p4686_p1 }
  0x31   :  { %4696 = shalt.err (!%p4693_p5)
}
  0x32   :  { %52 = dma.hbm_to_vmem [thread:$0]  %s4976_s2, 64, %s50_s30, [#allocation6]  }
  0x33   :  { %s4705_s14 = scalar_lea.vmem %s73_s10, 3072  ;;  %p4710_p7 = scmp.lt.s32.totalorder %s73_s10, %s73_s10 }
  0x34   :  { %p4706_p6 = scmp.ne.s32.totalorder %s73_s10, %s4705_s14  ;;  %p4711_p8 = scmp.lt.s32.totalorder %s4705_s14, %s4705_s14 }
  0x36   :  { %p4712_p9 = por %p4711_p8, %p4710_p7 }
  0x38   :  { %p4713_p10 = pnand %p4712_p9, %p4706_p6 }
  0x3a   :  { %4716 = shalt.err (!%p4713_p10)
}
  0x3b   :  { %s4778_s0 = smov 4   ;;  %s4779_s17 = smov [#allocation11]  }
  0x3c   :  { %78 = dma.hbm_to_vmem [thread:$0]  %s4979_s5, 3072, %s73_s10, [#allocation9], %s4775_s26, %s4775_s26, %s4778_s0  }
  0x3d   :  { %s86_s18 = sshll.u32 %s4779_s17, 4  ;;  %s87_s18 = int_to_ptr.vmem [resolvable:$true] %s86_s18 }
  0x3e   :  { %s4725_s2 = scalar_lea.vmem %s87_s18, 1024  ;;  %p4730_p12 = scmp.lt.s32.totalorder %s87_s18, %s87_s18 }
  0x3f   :  { %p4726_p11 = scmp.ne.s32.totalorder %s87_s18, %s4725_s2  ;;  %p4731_p13 = scmp.lt.s32.totalorder %s4725_s2, %s4725_s2 }
  0x41   :  { %p4732_p0 = por %p4731_p13, %p4730_p12 }
  0x43   :  { %p4733_p1 = pnand %p4732_p0, %p4726_p11 }
  0x45   :  { %4736 = shalt.err (!%p4733_p1)
}
  0x46   :  { %92 = dma.hbm_to_vmem [thread:$0]  %s4981_s7, 1024, %s87_s18, [#allocation12], %s4775_s26, %s4775_s26, %s4778_s0  }
  0x47   :  { %4757 = dma.done.wait [#allocation3], 4096  }
  0x48   :  { %4758 = vsyncadd [#allocation3], 4294963200 }
  0x49   :  { %4759 = dma.done.wait [#allocation6], 32832  }
  0x4a   :  { %4760 = vsyncadd [#allocation6], 4294934464 }
  0x4b   :  { %4761 = dma.done.wait [#allocation9], 15360  }
  0x4c   :  { %4762 = vsyncadd [#allocation9], 4294951936 }
  0x4d   :  { %4763 = dma.done.wait [#allocation12], 1024  }
  0x4e   :  { %4764 = vsyncadd [#allocation12], 4294966272  ;;  %v4073_v0 = vld [vmem:[#allocation5 + $0xe4] ss:$16 sps:$4 sm:$0xff]   ;;  %v4077_v2 = vld [vmem:[#allocation5 + $0xe0] ss:$16 sps:$4 sm:$0xff]  }
  0x4f   :  { %v4075_v1 = vld [vmem:[#allocation5 + $0x2e4] ss:$16 sps:$4 sm:$0xff]   ;;  %1720 = vmatprep.subr.bf16.mxu0 %v4073_v0  ;;  %v4078_v3 = vld [vmem:[#allocation5 + $0x2e0] ss:$16 sps:$4 sm:$0xff]   ;;  %v115_v46 = vld [vmem:[#allocation2 + $0x8] sm:$0xff]  ;;  %s4780_s23 = smov [#allocation13]  }
  0x50   :  { %1773 = vmatprep.subr.bf16.mxu1 %v4075_v1  ;;  %v4079_v4 = vld [vmem:[#allocation5 + $0xc4] ss:$16 sps:$4 sm:$0xff]   ;;  %1721 = vmatpush1.bf16.msra.mxu0 %v4077_v2  ;;  %v4083_v6 = vld [vmem:[#allocation5 + $0xc0] ss:$16 sps:$4 sm:$0xff]   ;;  %v123_v47 = vld [vmem:[#allocation2 + $0x48] sm:$0xff]  ;;  %s3495_s24 = sshll.u32 %s4780_s23, 4  ;;  %s3496_s24 = int_to_ptr.vmem [resolvable:$true] %s3495_s24 }
  0x51   :  { %1774 = vmatpush1.bf16.msra.mxu1 %v4078_v3  ;;  %v4081_v5 = vld [vmem:[#allocation5 + $0x2c4] ss:$16 sps:$4 sm:$0xff]   ;;  %1722 = vmatprep.subr.bf16.mxu0 %v4079_v4  ;;  %v4084_v7 = vld [vmem:[#allocation5 + $0x2c0] ss:$16 sps:$4 sm:$0xff]   ;;  %v117_v48 = vld [vmem:[#allocation2 + $0x18] sm:$0xff]  ;;  %v4856_v53 = vpack.c.bf16 %v123_v47, %v115_v46  ;;  %s4737_s1 = scalar_lea.vmem %s3496_s24, 256  ;;  %p4742_p3 = scmp.lt.s32.totalorder %s3496_s24, %s3496_s24 }
  0x52   :  { %1775 = vmatprep.subr.bf16.mxu1 %v4081_v5  ;;  %v4085_v8 = vld [vmem:[#allocation5 + $0xa4] ss:$16 sps:$4 sm:$0xff]   ;;  %v4089_v10 = vld [vmem:[#allocation5 + $0xa0] ss:$16 sps:$4 sm:$0xff]   ;;  %v125_v49 = vld [vmem:[#allocation2 + $0x58] sm:$0xff]  ;;  %p4738_p2 = scmp.ne.s32.totalorder %s3496_s24, %s4737_s1  ;;  %p4743_p4 = scmp.lt.s32.totalorder %s4737_s1, %s4737_s1 }
  0x53   :  { %v4087_v9 = vld [vmem:[#allocation5 + $0x2a4] ss:$16 sps:$4 sm:$0xff]   ;;  %v4090_v11 = vld [vmem:[#allocation5 + $0x2a0] ss:$16 sps:$4 sm:$0xff]   ;;  %v4858_v54 = vpack.c.bf16 %v125_v49, %v117_v48  ;;  %1752 = vmatprep.mubr.bf16.mxu0 %v4856_v53 }
  0x54   :  { %1723 = vmatpush1.bf16.msra.mxu0 %v4083_v6  ;;  %v4091_v12 = vld [vmem:[#allocation5 + $0x84] ss:$16 sps:$4 sm:$0xff]   ;;  %v4095_v14 = vld [vmem:[#allocation5 + $0x80] ss:$16 sps:$4 sm:$0xff]   ;;  %p4744_p5 = por %p4743_p4, %p4742_p3 }
  0x55   :  { %1776 = vmatpush1.bf16.msra.mxu1 %v4084_v7  ;;  %1724 = vmatprep.subr.bf16.mxu0 %v4085_v8  ;;  %v4093_v13 = vld [vmem:[#allocation5 + $0x284] ss:$16 sps:$4 sm:$0xff]   ;;  %v4096_v15 = vld [vmem:[#allocation5 + $0x280] ss:$16 sps:$4 sm:$0xff]  }
  0x56   :  { %1777 = vmatprep.subr.bf16.mxu1 %v4087_v9  ;;  %v4097_v16 = vld [vmem:[#allocation5 + $0x64] ss:$16 sps:$4 sm:$0xff]   ;;  %v4101_v18 = vld [vmem:[#allocation5 + $0x60] ss:$16 sps:$4 sm:$0xff]   ;;  %1805 = vmatprep.mubr.bf16.mxu1 %v4858_v54  ;;  %p4745_p6 = pnand %p4744_p5, %p4738_p2 }
  0x57   :  { %v4099_v17 = vld [vmem:[#allocation5 + $0x264] ss:$16 sps:$4 sm:$0xff]   ;;  %v4102_v19 = vld [vmem:[#allocation5 + $0x260] ss:$16 sps:$4 sm:$0xff]  }
  0x58   :  { %1725 = vmatpush1.bf16.msra.mxu0 %v4089_v10  ;;  %v4103_v20 = vld [vmem:[#allocation5 + $0x44] ss:$16 sps:$4 sm:$0xff]   ;;  %v4107_v22 = vld [vmem:[#allocation5 + $0x40] ss:$16 sps:$4 sm:$0xff]  }
  0x59   :  { %1778 = vmatpush1.bf16.msra.mxu1 %v4090_v11  ;;  %1726 = vmatprep.subr.bf16.mxu0 %v4091_v12  ;;  %v4105_v21 = vld [vmem:[#allocation5 + $0x244] ss:$16 sps:$4 sm:$0xff]   ;;  %v4108_v23 = vld [vmem:[#allocation5 + $0x240] ss:$16 sps:$4 sm:$0xff]  }
  0x5a   :  { %1779 = vmatprep.subr.bf16.mxu1 %v4093_v13  ;;  %v4109_v24 = vld [vmem:[#allocation5 + $0x24] ss:$16 sps:$4 sm:$0xff]   ;;  %v4113_v26 = vld [vmem:[#allocation5 + $0x20] ss:$16 sps:$4 sm:$0xff]  }
  0x5b   :  { %v4111_v25 = vld [vmem:[#allocation5 + $0x224] ss:$16 sps:$4 sm:$0xff]   ;;  %v4114_v27 = vld [vmem:[#allocation5 + $0x220] ss:$16 sps:$4 sm:$0xff]  }
  0x5c   :  { %1727 = vmatpush1.bf16.msra.mxu0 %v4095_v14  ;;  %v4115_v28 = vld [vmem:[#allocation5 + $0x4] ss:$16 sps:$4 sm:$0xff]   ;;  %v4119_v30 = vld [vmem:[#allocation5] ss:$16 sps:$4 sm:$0xff]  }
  0x5d   :  { %1780 = vmatpush1.bf16.msra.mxu1 %v4096_v15  ;;  %1728 = vmatprep.subr.bf16.mxu0 %v4097_v16  ;;  %v4117_v29 = vld [vmem:[#allocation5 + $0x204] ss:$16 sps:$4 sm:$0xff]   ;;  %v4120_v31 = vld [vmem:[#allocation5 + $0x200] ss:$16 sps:$4 sm:$0xff]  }
  0x5e   :  { %1781 = vmatprep.subr.bf16.mxu1 %v4099_v17  ;;  %v4121_v32 = vld [vmem:[#allocation5 + $0x1e4] ss:$16 sps:$4 sm:$0xff]   ;;  %v4125_v34 = vld [vmem:[#allocation5 + $0x1e0] ss:$16 sps:$4 sm:$0xff]  }
  0x5f   :  { %v4123_v33 = vld [vmem:[#allocation5 + $0x3e4] ss:$16 sps:$4 sm:$0xff]   ;;  %v4126_v35 = vld [vmem:[#allocation5 + $0x3e0] ss:$16 sps:$4 sm:$0xff]  }
  0x60   :  { %1729 = vmatpush1.bf16.msra.mxu0 %v4101_v18  ;;  %v4127_v36 = vld [vmem:[#allocation5 + $0x1c4] ss:$16 sps:$4 sm:$0xff]   ;;  %v4131_v38 = vld [vmem:[#allocation5 + $0x1c0] ss:$16 sps:$4 sm:$0xff]  }
  0x61   :  { %1782 = vmatpush1.bf16.msra.mxu1 %v4102_v19  ;;  %1730 = vmatprep.subr.bf16.mxu0 %v4103_v20  ;;  %v4129_v37 = vld [vmem:[#allocation5 + $0x3c4] ss:$16 sps:$4 sm:$0xff]   ;;  %v4132_v39 = vld [vmem:[#allocation5 + $0x3c0] ss:$16 sps:$4 sm:$0xff]  }
  0x62   :  { %1783 = vmatprep.subr.bf16.mxu1 %v4105_v21  ;;  %v4133_v40 = vld [vmem:[#allocation5 + $0x1a4] ss:$16 sps:$4 sm:$0xff]   ;;  %v4137_v42 = vld [vmem:[#allocation5 + $0x1a0] ss:$16 sps:$4 sm:$0xff]  }
  0x63   :  { %v4135_v41 = vld [vmem:[#allocation5 + $0x3a4] ss:$16 sps:$4 sm:$0xff]   ;;  %v4138_v43 = vld [vmem:[#allocation5 + $0x3a0] ss:$16 sps:$4 sm:$0xff]  }
  0x64   :  { %1731 = vmatpush1.bf16.msra.mxu0 %v4107_v22  ;;  %v4139_v44 = vld [vmem:[#allocation5 + $0x184] ss:$16 sps:$4 sm:$0xff]   ;;  %v4143_v50 = vld [vmem:[#allocation5 + $0x180] ss:$16 sps:$4 sm:$0xff]  }
  0x65   :  { %1784 = vmatpush1.bf16.msra.mxu1 %v4108_v23  ;;  %1732 = vmatprep.subr.bf16.mxu0 %v4109_v24  ;;  %v4141_v45 = vld [vmem:[#allocation5 + $0x384] ss:$16 sps:$4 sm:$0xff]   ;;  %v4144_v51 = vld [vmem:[#allocation5 + $0x380] ss:$16 sps:$4 sm:$0xff]  }
  0x66   :  { %1785 = vmatprep.subr.bf16.mxu1 %v4111_v25  ;;  %v4145_v52 = vld [vmem:[#allocation5 + $0x164] ss:$16 sps:$4 sm:$0xff]   ;;  %v4149_v56 = vld [vmem:[#allocation5 + $0x160] ss:$16 sps:$4 sm:$0xff]  }
  0x67   :  { %v4147_v55 = vld [vmem:[#allocation5 + $0x364] ss:$16 sps:$4 sm:$0xff]   ;;  %v4150_v57 = vld [vmem:[#allocation5 + $0x360] ss:$16 sps:$4 sm:$0xff]  }
  0x68   :  { %1733 = vmatpush1.bf16.msra.mxu0 %v4113_v26  ;;  %v4151_v58 = vld [vmem:[#allocation5 + $0x144] ss:$16 sps:$4 sm:$0xff]   ;;  %v4155_v60 = vld [vmem:[#allocation5 + $0x140] ss:$16 sps:$4 sm:$0xff]  }
  0x69   :  { %1786 = vmatpush1.bf16.msra.mxu1 %v4114_v27  ;;  %1734 = vmatprep.subr.bf16.mxu0 %v4115_v28  ;;  %v4153_v59 = vld [vmem:[#allocation5 + $0x344] ss:$16 sps:$4 sm:$0xff]   ;;  %v4156_v61 = vld [vmem:[#allocation5 + $0x340] ss:$16 sps:$4 sm:$0xff]  }
  0x6a   :  { %1787 = vmatprep.subr.bf16.mxu1 %v4117_v29  ;;  %v4157_v62 = vld [vmem:[#allocation5 + $0x124] ss:$16 sps:$4 sm:$0xff]   ;;  %v4161_v0 = vld [vmem:[#allocation5 + $0x120] ss:$16 sps:$4 sm:$0xff]  }
  0x6b   :  { %v4159_v63 = vld [vmem:[#allocation5 + $0x324] ss:$16 sps:$4 sm:$0xff]   ;;  %v4162_v1 = vld [vmem:[#allocation5 + $0x320] ss:$16 sps:$4 sm:$0xff]  }
  0x6c   :  { %1735 = vmatpush1.bf16.msra.mxu0 %v4119_v30  ;;  %v4163_v2 = vld [vmem:[#allocation5 + $0x104] ss:$16 sps:$4 sm:$0xff]   ;;  %v4167_v4 = vld [vmem:[#allocation5 + $0x100] ss:$16 sps:$4 sm:$0xff]  }
  0x6d   :  { %1788 = vmatpush1.bf16.msra.mxu1 %v4120_v31  ;;  %1736 = vmatprep.subr.bf16.mxu0 %v4121_v32  ;;  %v4165_v3 = vld [vmem:[#allocation5 + $0x304] ss:$16 sps:$4 sm:$0xff]   ;;  %v4168_v5 = vld [vmem:[#allocation5 + $0x300] ss:$16 sps:$4 sm:$0xff]  }
  0x6e   :  { %1789 = vmatprep.subr.bf16.mxu1 %v4123_v33  ;;  %v114_v6 = vld [vmem:[#allocation2] sm:$0xff]  ;;  %v116_v8 = vld [vmem:[#allocation2 + $0x10] sm:$0xff] }
  0x6f   :  { %v122_v7 = vld [vmem:[#allocation2 + $0x40] sm:$0xff]  ;;  %v124_v9 = vld [vmem:[#allocation2 + $0x50] sm:$0xff] }
  0x70   :  { %1737 = vmatpush2.bf16.msra.mxu0 %v4125_v34  ;;  %v4171_v10 = vld [vmem:[#allocation5 + $0x4e4] ss:$16 sps:$4 sm:$0xff]   ;;  %v4862_v12 = vpack.c.bf16 %v122_v7, %v114_v6  ;;  %v4864_v13 = vpack.c.bf16 %v124_v9, %v116_v8  ;;  %v4169_v14 = vld [vmem:[#allocation5 + $0x4e0] ss:$16 sps:$4 sm:$0xff]   ;;  %v131_v34 = vld [vmem:[#allocation2 + $0x88] sm:$0xff] }
  0x71   :  { %1790 = vmatpush2.bf16.msra.mxu1 %v4126_v35  ;;  %1738 = vmatprep.subr.bf16.mxu0 %v4127_v36  ;;  %v4174_v11 = vld [vmem:[#allocation5 + $0x6e4] ss:$16 sps:$4 sm:$0xff]   ;;  %v4172_v15 = vld [vmem:[#allocation5 + $0x6e0] ss:$16 sps:$4 sm:$0xff]   ;;  %v139_v35 = vld [vmem:[#allocation2 + $0xc8] sm:$0xff] }
  0x72   :  { %1791 = vmatprep.subr.bf16.mxu1 %v4129_v37  ;;  %v4177_v16 = vld [vmem:[#allocation5 + $0x4c4] ss:$16 sps:$4 sm:$0xff]   ;;  %v4175_v18 = vld [vmem:[#allocation5 + $0x4c0] ss:$16 sps:$4 sm:$0xff]   ;;  %v4868_v37 = vpack.c.bf16 %v139_v35, %v131_v34 }
  0x73   :  { %v4180_v17 = vld [vmem:[#allocation5 + $0x6c4] ss:$16 sps:$4 sm:$0xff]   ;;  %v4178_v19 = vld [vmem:[#allocation5 + $0x6c0] ss:$16 sps:$4 sm:$0xff]  }
  0x74   :  { %1739 = vmatpush2.bf16.msra.mxu0 %v4131_v38  ;;  %v4183_v20 = vld [vmem:[#allocation5 + $0x4a4] ss:$16 sps:$4 sm:$0xff]   ;;  %v4181_v22 = vld [vmem:[#allocation5 + $0x4a0] ss:$16 sps:$4 sm:$0xff]  }
  0x75   :  { %1792 = vmatpush2.bf16.msra.mxu1 %v4132_v39  ;;  %1740 = vmatprep.subr.bf16.mxu0 %v4133_v40  ;;  %v4186_v21 = vld [vmem:[#allocation5 + $0x6a4] ss:$16 sps:$4 sm:$0xff]   ;;  %v4184_v23 = vld [vmem:[#allocation5 + $0x6a0] ss:$16 sps:$4 sm:$0xff]   ;;  %v133_v39 = vld [vmem:[#allocation2 + $0x98] sm:$0xff] }
  0x76   :  { %1793 = vmatprep.subr.bf16.mxu1 %v4135_v41  ;;  %v4189_v24 = vld [vmem:[#allocation5 + $0x484] ss:$16 sps:$4 sm:$0xff]   ;;  %v4187_v26 = vld [vmem:[#allocation5 + $0x480] ss:$16 sps:$4 sm:$0xff]   ;;  %v141_v40 = vld [vmem:[#allocation2 + $0xd8] sm:$0xff] }
  0x77   :  { %v4192_v25 = vld [vmem:[#allocation5 + $0x684] ss:$16 sps:$4 sm:$0xff]   ;;  %v4190_v27 = vld [vmem:[#allocation5 + $0x680] ss:$16 sps:$4 sm:$0xff]  }
  0x78   :  { %1741 = vmatpush2.bf16.msra.mxu0 %v4137_v42  ;;  %v4195_v28 = vld [vmem:[#allocation5 + $0x464] ss:$16 sps:$4 sm:$0xff]   ;;  %v4193_v30 = vld [vmem:[#allocation5 + $0x460] ss:$16 sps:$4 sm:$0xff]  }
  0x79   :  { %1794 = vmatpush2.bf16.msra.mxu1 %v4138_v43  ;;  %1742 = vmatprep.subr.bf16.mxu0 %v4139_v44  ;;  %v4198_v29 = vld [vmem:[#allocation5 + $0x664] ss:$16 sps:$4 sm:$0xff]   ;;  %v4196_v31 = vld [vmem:[#allocation5 + $0x660] ss:$16 sps:$4 sm:$0xff]   ;;  %v4872_v43 = vpack.c.bf16 %v141_v40, %v133_v39  ;;  %v4267_v39 = vld [vmem:[#allocation5 + $0xec] ss:$16 sps:$4 sm:$0xff]  }
  0x7a   :  { %1795 = vmatprep.subr.bf16.mxu1 %v4141_v45  ;;  %v4201_v32 = vld [vmem:[#allocation5 + $0x444] ss:$16 sps:$4 sm:$0xff]   ;;  %v4199_v41 = vld [vmem:[#allocation5 + $0x440] ss:$16 sps:$4 sm:$0xff]   ;;  %v4270_v40 = vld [vmem:[#allocation5 + $0x2ec] ss:$16 sps:$4 sm:$0xff]  }
  0x7b   :  { %v4204_v33 = vld [vmem:[#allocation5 + $0x644] ss:$16 sps:$4 sm:$0xff]   ;;  %v4202_v44 = vld [vmem:[#allocation5 + $0x640] ss:$16 sps:$4 sm:$0xff]  }
  0x7c   :  { %1743 = vmatpush2.bf16.msra.mxu0 %v4143_v50  ;;  %v130_v36 = vld [vmem:[#allocation2 + $0x80] sm:$0xff]  ;;  %v132_v47 = vld [vmem:[#allocation2 + $0x90] sm:$0xff] }
  0x7d   :  { %1796 = vmatpush2.bf16.msra.mxu1 %v4144_v51  ;;  %1744 = vmatprep.subr.bf16.mxu0 %v4145_v52  ;;  %v138_v38 = vld [vmem:[#allocation2 + $0xc0] sm:$0xff]  ;;  %v140_v48 = vld [vmem:[#allocation2 + $0xd0] sm:$0xff] }
  0x7e   :  { %1797 = vmatprep.subr.bf16.mxu1 %v4147_v55  ;;  %v4870_v42 = vpack.c.bf16 %v138_v38, %v130_v36  ;;  %v4207_v45 = vld [vmem:[#allocation5 + $0x424] ss:$16 sps:$4 sm:$0xff]   ;;  %v4877_v49 = vpack.c.bf16 %v140_v48, %v132_v47  ;;  %v4205_v50 = vld [vmem:[#allocation5 + $0x420] ss:$16 sps:$4 sm:$0xff]  }
  0x7f   :  { %v4210_v46 = vld [vmem:[#allocation5 + $0x624] ss:$16 sps:$4 sm:$0xff]   ;;  %v4208_v51 = vld [vmem:[#allocation5 + $0x620] ss:$16 sps:$4 sm:$0xff]  }
  0x80   :  { %1745 = vmatpush2.bf16.msra.mxu0 %v4149_v56  ;;  %v4213_v52 = vld [vmem:[#allocation5 + $0x404] ss:$16 sps:$4 sm:$0xff]   ;;  %v119_v56 = vld [vmem:[#allocation2 + $0x28] sm:$0xff]  ;;  %v4223_v6 = vld [vmem:[#allocation5 + $0x5c0] ss:$16 sps:$4 sm:$0xff]  }
  0x81   :  { %1798 = vmatpush2.bf16.msra.mxu1 %v4150_v57  ;;  %1746 = vmatprep.subr.bf16.mxu0 %v4151_v58  ;;  %v4216_v55 = vld [vmem:[#allocation5 + $0x604] ss:$16 sps:$4 sm:$0xff]   ;;  %v127_v57 = vld [vmem:[#allocation2 + $0x68] sm:$0xff]  ;;  %v121_v58 = vld [vmem:[#allocation2 + $0x38] sm:$0xff] }
  0x82   :  { %1799 = vmatprep.subr.bf16.mxu1 %v4153_v59  ;;  %v129_v59 = vld [vmem:[#allocation2 + $0x78] sm:$0xff]  ;;  %v4226_v7 = vld [vmem:[#allocation5 + $0x7c0] ss:$16 sps:$4 sm:$0xff]   ;;  %v4231_v8 = vld [vmem:[#allocation5 + $0x5a4] ss:$16 sps:$4 sm:$0xff]  }
  0x83   :  { %v4234_v9 = vld [vmem:[#allocation5 + $0x7a4] ss:$16 sps:$4 sm:$0xff]  }
  0x84   :  { %1747 = vmatpush2.bf16.msra.mxu0 %v4155_v60  ;;  %v4211_v60 = vld [vmem:[#allocation5 + $0x400] ss:$16 sps:$4 sm:$0xff]  }
  0x85   :  { %1800 = vmatpush2.bf16.msra.mxu1 %v4156_v61  ;;  %1748 = vmatprep.subr.bf16.mxu0 %v4157_v62  ;;  %v4214_v61 = vld [vmem:[#allocation5 + $0x600] ss:$16 sps:$4 sm:$0xff]   ;;  %v4219_v62 = vld [vmem:[#allocation5 + $0x5e4] ss:$16 sps:$4 sm:$0xff]  }
  0x86   :  { %1801 = vmatprep.subr.bf16.mxu1 %v4159_v63  ;;  %v4880_v63 = vpack.c.bf16 %v127_v57, %v119_v56  ;;  %v118_v34 = vld [vmem:[#allocation2 + $0x20] sm:$0xff]  ;;  %v120_v36 = vld [vmem:[#allocation2 + $0x30] sm:$0xff]  ;;  %v4271_v56 = vld [vmem:[#allocation5 + $0xc8] ss:$16 sps:$4 sm:$0xff]  }
  0x87   :  { %v126_v35 = vld [vmem:[#allocation2 + $0x60] sm:$0xff]  ;;  %v128_v38 = vld [vmem:[#allocation2 + $0x70] sm:$0xff]  ;;  %v4274_v57 = vld [vmem:[#allocation5 + $0x2c8] ss:$16 sps:$4 sm:$0xff]  }
  0x88   :  { %1749 = vmatpush2.bf16.msra.mxu0 %v4161_v0  ;;  %v4882_v0 = vpack.c.bf16 %v129_v59, %v121_v58  ;;  %v4886_v47 = vpack.c.bf16 %v126_v35, %v118_v34  ;;  %v4888_v48 = vpack.c.bf16 %v128_v38, %v120_v36  ;;  %v134_v59 = vld [vmem:[#allocation2 + $0xa0] sm:$0xff]  ;;  %v4319_v34 = vld [vmem:[#allocation5 + $0x1c8] ss:$16 sps:$4 sm:$0xff]   ;;  %v4327_v36 = vld [vmem:[#allocation5 + $0x1ac] ss:$16 sps:$4 sm:$0xff]  }
  0x89   :  { %1802 = vmatpush2.bf16.msra.mxu1 %v4162_v1  ;;  %1750 = vmatprep.subr.bf16.mxu0 %v4163_v2  ;;  %v4222_v1 = vld [vmem:[#allocation5 + $0x7e4] ss:$16 sps:$4 sm:$0xff]   ;;  %v4217_v2 = vld [vmem:[#allocation5 + $0x5e0] ss:$16 sps:$4 sm:$0xff]   ;;  %v4322_v35 = vld [vmem:[#allocation5 + $0x3c8] ss:$16 sps:$4 sm:$0xff]  }
  0x8a   :  { %1803 = vmatprep.subr.bf16.mxu1 %v4165_v3  ;;  %v4220_v3 = vld [vmem:[#allocation5 + $0x7e0] ss:$16 sps:$4 sm:$0xff]   ;;  %v4330_v38 = vld [vmem:[#allocation5 + $0x3ac] ss:$16 sps:$4 sm:$0xff]  }
  0x8c   :  { %1751 = vmatpush2.bf16.msra.mxu0 %v4167_v4  ;;  %v4225_v4 = vld [vmem:[#allocation5 + $0x5c4] ss:$16 sps:$4 sm:$0xff]  }
  0x8d   :  { %1804 = vmatpush2.bf16.msra.mxu1 %v4168_v5  ;;  %1826 = vmatprep.subr.bf16.mxu0 %v4171_v10  ;;  %v4228_v5 = vld [vmem:[#allocation5 + $0x7c4] ss:$16 sps:$4 sm:$0xff]   ;;  %v4229_v10 = vld [vmem:[#allocation5 + $0x5a0] ss:$16 sps:$4 sm:$0xff]  }
  0x8e   :  { %1879 = vmatprep.subr.bf16.mxu1 %v4174_v11  ;;  %v4232_v11 = vld [vmem:[#allocation5 + $0x7a0] ss:$16 sps:$4 sm:$0xff]  }
  0x8f   :  { %1753 = vmatmul.mubr.bf16.vlgmr.msra.gmra.mxu0 %v4862_v12 }
  0x90   :  { %1806 = vmatmul.mubr.bf16.vlgmr.msra.gmra.mxu1 %v4864_v13  ;;  %1827 = vmatpush1.bf16.msra.mxu0 %v4169_v14  ;;  %v4237_v14 = vld [vmem:[#allocation5 + $0x584] ss:$16 sps:$4 sm:$0xff]  }
  0x91   :  { %1880 = vmatpush1.bf16.msra.mxu1 %v4172_v15  ;;  %1828 = vmatprep.subr.bf16.mxu0 %v4177_v16  ;;  %v4240_v15 = vld [vmem:[#allocation5 + $0x784] ss:$16 sps:$4 sm:$0xff]   ;;  %v4235_v16 = vld [vmem:[#allocation5 + $0x580] ss:$16 sps:$4 sm:$0xff]  }
  0x92   :  { %1881 = vmatprep.subr.bf16.mxu1 %v4180_v17  ;;  %1762 = vmatprep.mubr.bf16.mxu0 %v4868_v37  ;;  %v4238_v17 = vld [vmem:[#allocation5 + $0x780] ss:$16 sps:$4 sm:$0xff]  }
  0x93   :  { %1815 = vmatprep.mubr.bf16.mxu1 %v4872_v43 }
  0x94   :  { %1829 = vmatpush1.bf16.msra.mxu0 %v4175_v18  ;;  %v4243_v18 = vld [vmem:[#allocation5 + $0x564] ss:$16 sps:$4 sm:$0xff]  }
  0x95   :  { %1882 = vmatpush1.bf16.msra.mxu1 %v4178_v19  ;;  %1830 = vmatprep.subr.bf16.mxu0 %v4183_v20  ;;  %v4246_v19 = vld [vmem:[#allocation5 + $0x764] ss:$16 sps:$4 sm:$0xff]   ;;  %v4241_v20 = vld [vmem:[#allocation5 + $0x560] ss:$16 sps:$4 sm:$0xff]  }
  0x96   :  { %1883 = vmatprep.subr.bf16.mxu1 %v4186_v21  ;;  %v4244_v21 = vld [vmem:[#allocation5 + $0x760] ss:$16 sps:$4 sm:$0xff]  }
  0x97   :  { %1763 = vmatmul.mubr.bf16.gmra.mxu0 %v4870_v42 }
  0x98   :  { %1831 = vmatpush1.bf16.msra.mxu0 %v4181_v22  ;;  %1816 = vmatmul.mubr.bf16.gmra.mxu1 %v4877_v49  ;;  %v4249_v22 = vld [vmem:[#allocation5 + $0x544] ss:$16 sps:$4 sm:$0xff]  }
  0x99   :  { %1884 = vmatpush1.bf16.msra.mxu1 %v4184_v23  ;;  %1832 = vmatprep.subr.bf16.mxu0 %v4189_v24  ;;  %v4252_v23 = vld [vmem:[#allocation5 + $0x744] ss:$16 sps:$4 sm:$0xff]   ;;  %v4247_v24 = vld [vmem:[#allocation5 + $0x540] ss:$16 sps:$4 sm:$0xff]  }
  0x9a   :  { %1885 = vmatprep.subr.bf16.mxu1 %v4192_v25  ;;  %1858 = vmatprep.mubr.bf16.mxu0 %v4880_v63  ;;  %v4250_v25 = vld [vmem:[#allocation5 + $0x740] ss:$16 sps:$4 sm:$0xff]  }
  0x9b   :  { %1911 = vmatprep.mubr.bf16.mxu1 %v4882_v0 }
  0x9c   :  { %1833 = vmatpush1.bf16.msra.mxu0 %v4187_v26  ;;  %v4255_v26 = vld [vmem:[#allocation5 + $0x524] ss:$16 sps:$4 sm:$0xff]  }
  0x9d   :  { %1886 = vmatpush1.bf16.msra.mxu1 %v4190_v27  ;;  %1834 = vmatprep.subr.bf16.mxu0 %v4195_v28  ;;  %v4258_v27 = vld [vmem:[#allocation5 + $0x724] ss:$16 sps:$4 sm:$0xff]   ;;  %v4253_v28 = vld [vmem:[#allocation5 + $0x520] ss:$16 sps:$4 sm:$0xff]  }
  0x9e   :  { %1887 = vmatprep.subr.bf16.mxu1 %v4198_v29  ;;  %v4256_v29 = vld [vmem:[#allocation5 + $0x720] ss:$16 sps:$4 sm:$0xff]  }
  0xa0   :  { %1835 = vmatpush1.bf16.msra.mxu0 %v4193_v30  ;;  %v4261_v30 = vld [vmem:[#allocation5 + $0x504] ss:$16 sps:$4 sm:$0xff]  }
  0xa1   :  { %1888 = vmatpush1.bf16.msra.mxu1 %v4196_v31  ;;  %1836 = vmatprep.subr.bf16.mxu0 %v4201_v32  ;;  %v4264_v31 = vld [vmem:[#allocation5 + $0x704] ss:$16 sps:$4 sm:$0xff]   ;;  %v4259_v32 = vld [vmem:[#allocation5 + $0x500] ss:$16 sps:$4 sm:$0xff]  }
  0xa2   :  { %1889 = vmatprep.subr.bf16.mxu1 %v4204_v33  ;;  %v4262_v33 = vld [vmem:[#allocation5 + $0x700] ss:$16 sps:$4 sm:$0xff]  }
  0xa4   :  { %1837 = vmatpush1.bf16.msra.mxu0 %v4199_v41  ;;  %v4265_v41 = vld [vmem:[#allocation5 + $0xe8] ss:$16 sps:$4 sm:$0xff]  }
  0xa5   :  { %1890 = vmatpush1.bf16.msra.mxu1 %v4202_v44  ;;  %1838 = vmatprep.subr.bf16.mxu0 %v4207_v45  ;;  %v4268_v44 = vld [vmem:[#allocation5 + $0x2e8] ss:$16 sps:$4 sm:$0xff]  }
  0xa6   :  { %1891 = vmatprep.subr.bf16.mxu1 %v4210_v46  ;;  %v135_v45 = vld [vmem:[#allocation2 + $0xa8] sm:$0xff] }
  0xa7   :  { %v143_v46 = vld [vmem:[#allocation2 + $0xe8] sm:$0xff] }
  0xa8   :  { %1839 = vmatpush1.bf16.msra.mxu0 %v4205_v50  ;;  %v137_v50 = vld [vmem:[#allocation2 + $0xb8] sm:$0xff]  ;;  %v4890_v58 = vpack.c.bf16 %v143_v46, %v135_v45 }
  0xa9   :  { %1892 = vmatpush1.bf16.msra.mxu1 %v4208_v51  ;;  %1840 = vmatprep.subr.bf16.mxu0 %v4213_v52  ;;  %v145_v51 = vld [vmem:[#allocation2 + $0xf8] sm:$0xff] }
  0xaa   :  { %1893 = vmatprep.subr.bf16.mxu1 %v4216_v55  ;;  %v4273_v52 = vld [vmem:[#allocation5 + $0xcc] ss:$16 sps:$4 sm:$0xff]   ;;  %v4331_v45 = vld [vmem:[#allocation5 + $0x188] ss:$16 sps:$4 sm:$0xff]  }
  0xab   :  { %v4276_v55 = vld [vmem:[#allocation5 + $0x2cc] ss:$16 sps:$4 sm:$0xff]   ;;  %v4334_v46 = vld [vmem:[#allocation5 + $0x388] ss:$16 sps:$4 sm:$0xff]  }
  0xac   :  { %1841 = vmatpush1.bf16.msra.mxu0 %v4211_v60  ;;  %v142_v60 = vld [vmem:[#allocation2 + $0xe0] sm:$0xff] }
  0xad   :  { %1894 = vmatpush1.bf16.msra.mxu1 %v4214_v61  ;;  %1842 = vmatprep.subr.bf16.mxu0 %v4219_v62  ;;  %v4892_v61 = vpack.c.bf16 %v145_v51, %v137_v50  ;;  %v4279_v62 = vld [vmem:[#allocation5 + $0xac] ss:$16 sps:$4 sm:$0xff]  }
  0xae   :  { %1895 = vmatprep.subr.bf16.mxu1 %v4222_v1  ;;  %v136_v1 = vld [vmem:[#allocation2 + $0xb0] sm:$0xff]  ;;  %v4339_v50 = vld [vmem:[#allocation5 + $0x16c] ss:$16 sps:$4 sm:$0xff]  }
  0xaf   :  { %v4342_v51 = vld [vmem:[#allocation5 + $0x36c] ss:$16 sps:$4 sm:$0xff]  }
  0xb0   :  { %1843 = vmatpush2.bf16.msra.mxu0 %v4217_v2  ;;  %v144_v2 = vld [vmem:[#allocation2 + $0xf0] sm:$0xff] }
  0xb1   :  { %1896 = vmatpush2.bf16.msra.mxu1 %v4220_v3  ;;  %1844 = vmatprep.subr.bf16.mxu0 %v4225_v4  ;;  %v4282_v3 = vld [vmem:[#allocation5 + $0x2ac] ss:$16 sps:$4 sm:$0xff]   ;;  %v4898_v4 = vpack.c.bf16 %v142_v60, %v134_v59  ;;  %v4343_v59 = vld [vmem:[#allocation5 + $0x148] ss:$16 sps:$4 sm:$0xff]  }
  0xb2   :  { %1897 = vmatprep.subr.bf16.mxu1 %v4228_v5  ;;  %v4277_v5 = vld [vmem:[#allocation5 + $0xa8] ss:$16 sps:$4 sm:$0xff]  }
  0xb3   :  { %v4346_v60 = vld [vmem:[#allocation5 + $0x348] ss:$16 sps:$4 sm:$0xff]  }
  0xb4   :  { %1845 = vmatpush2.bf16.msra.mxu0 %v4223_v6  ;;  %v4280_v6 = vld [vmem:[#allocation5 + $0x2a8] ss:$16 sps:$4 sm:$0xff]  }
  0xb5   :  { %1898 = vmatpush2.bf16.msra.mxu1 %v4226_v7  ;;  %1846 = vmatprep.subr.bf16.mxu0 %v4231_v8  ;;  %v4900_v7 = vpack.c.bf16 %v144_v2, %v136_v1  ;;  %v4285_v8 = vld [vmem:[#allocation5 + $0x8c] ss:$16 sps:$4 sm:$0xff]   ;;  %v4349_v2 = vld [vmem:[#allocation5 + $0x128] ss:$16 sps:$4 sm:$0xff]  }
  0xb6   :  { %1899 = vmatprep.subr.bf16.mxu1 %v4234_v9  ;;  %v4288_v9 = vld [vmem:[#allocation5 + $0x28c] ss:$16 sps:$4 sm:$0xff]  }
  0xb7   :  { %v4354_v1 = vld [vmem:[#allocation5 + $0x32c] ss:$16 sps:$4 sm:$0xff]  }
  0xb8   :  { %1847 = vmatpush2.bf16.msra.mxu0 %v4229_v10  ;;  %v4283_v10 = vld [vmem:[#allocation5 + $0x88] ss:$16 sps:$4 sm:$0xff]  }
  0xb9   :  { %1900 = vmatpush2.bf16.msra.mxu1 %v4232_v11  ;;  %1848 = vmatprep.subr.bf16.mxu0 %v4237_v14  ;;  %v4286_v11 = vld [vmem:[#allocation5 + $0x288] ss:$16 sps:$4 sm:$0xff]   ;;  %v4291_v14 = vld [vmem:[#allocation5 + $0x6c] ss:$16 sps:$4 sm:$0xff]  }
  0xba   :  { %1901 = vmatprep.subr.bf16.mxu1 %v4240_v15  ;;  %v4294_v15 = vld [vmem:[#allocation5 + $0x26c] ss:$16 sps:$4 sm:$0xff]  }
  0xbc   :  { %1849 = vmatpush2.bf16.msra.mxu0 %v4235_v16  ;;  %v4289_v16 = vld [vmem:[#allocation5 + $0x68] ss:$16 sps:$4 sm:$0xff]  }
  0xbd   :  { %1902 = vmatpush2.bf16.msra.mxu1 %v4238_v17  ;;  %1850 = vmatprep.subr.bf16.mxu0 %v4243_v18  ;;  %v4292_v17 = vld [vmem:[#allocation5 + $0x268] ss:$16 sps:$4 sm:$0xff]   ;;  %v4297_v18 = vld [vmem:[#allocation5 + $0x4c] ss:$16 sps:$4 sm:$0xff]  }
  0xbe   :  { %1903 = vmatprep.subr.bf16.mxu1 %v4246_v19  ;;  %v4300_v19 = vld [vmem:[#allocation5 + $0x24c] ss:$16 sps:$4 sm:$0xff]  }
  0xc0   :  { %1851 = vmatpush2.bf16.msra.mxu0 %v4241_v20  ;;  %v4295_v20 = vld [vmem:[#allocation5 + $0x48] ss:$16 sps:$4 sm:$0xff]  }
  0xc1   :  { %1904 = vmatpush2.bf16.msra.mxu1 %v4244_v21  ;;  %1852 = vmatprep.subr.bf16.mxu0 %v4249_v22  ;;  %v4298_v21 = vld [vmem:[#allocation5 + $0x248] ss:$16 sps:$4 sm:$0xff]   ;;  %v4303_v22 = vld [vmem:[#allocation5 + $0x2c] ss:$16 sps:$4 sm:$0xff]  }
  0xc2   :  { %1905 = vmatprep.subr.bf16.mxu1 %v4252_v23  ;;  %v4306_v23 = vld [vmem:[#allocation5 + $0x22c] ss:$16 sps:$4 sm:$0xff]  }
  0xc4   :  { %1853 = vmatpush2.bf16.msra.mxu0 %v4247_v24  ;;  %v4301_v24 = vld [vmem:[#allocation5 + $0x28] ss:$16 sps:$4 sm:$0xff]  }
  0xc5   :  { %1906 = vmatpush2.bf16.msra.mxu1 %v4250_v25  ;;  %1854 = vmatprep.subr.bf16.mxu0 %v4255_v26  ;;  %v4312_v25 = vld [vmem:[#allocation5 + $0x20c] ss:$16 sps:$4 sm:$0xff]   ;;  %v4307_v26 = vld [vmem:[#allocation5 + $0x8] ss:$16 sps:$4 sm:$0xff]  }
  0xc6   :  { %1907 = vmatprep.subr.bf16.mxu1 %v4258_v27  ;;  %v4310_v27 = vld [vmem:[#allocation5 + $0x208] ss:$16 sps:$4 sm:$0xff]  }
  0xc8   :  { %1855 = vmatpush2.bf16.msra.mxu0 %v4253_v28  ;;  %v4315_v28 = vld [vmem:[#allocation5 + $0x1ec] ss:$16 sps:$4 sm:$0xff]  }
  0xc9   :  { %1908 = vmatpush2.bf16.msra.mxu1 %v4256_v29  ;;  %1856 = vmatprep.subr.bf16.mxu0 %v4261_v30  ;;  %v4318_v29 = vld [vmem:[#allocation5 + $0x3ec] ss:$16 sps:$4 sm:$0xff]   ;;  %v4313_v30 = vld [vmem:[#allocation5 + $0x1e8] ss:$16 sps:$4 sm:$0xff]  }
  0xca   :  { %1909 = vmatprep.subr.bf16.mxu1 %v4264_v31  ;;  %v4316_v31 = vld [vmem:[#allocation5 + $0x3e8] ss:$16 sps:$4 sm:$0xff]  }
  0xcc   :  { %1857 = vmatpush2.bf16.msra.mxu0 %v4259_v32  ;;  %v4321_v32 = vld [vmem:[#allocation5 + $0x1cc] ss:$16 sps:$4 sm:$0xff]  }
  0xcd   :  { %1910 = vmatpush2.bf16.msra.mxu1 %v4262_v33  ;;  %1932 = vmatprep.subr.bf16.mxu0 %v4267_v39  ;;  %v4324_v33 = vld [vmem:[#allocation5 + $0x3cc] ss:$16 sps:$4 sm:$0xff]   ;;  %v4325_v39 = vld [vmem:[#allocation5 + $0x1a8] ss:$16 sps:$4 sm:$0xff]  }
  0xce   :  { %1985 = vmatprep.subr.bf16.mxu1 %v4270_v40  ;;  %v4328_v40 = vld [vmem:[#allocation5 + $0x3a8] ss:$16 sps:$4 sm:$0xff]  }
  0xcf   :  { %1859 = vmatmul.mubr.bf16.vlgmr.msra.gmra.mxu0 %v4886_v47 }
  0xd0   :  { %1912 = vmatmul.mubr.bf16.vlgmr.msra.gmra.mxu1 %v4888_v48  ;;  %1933 = vmatpush1.bf16.msra.mxu0 %v4265_v41  ;;  %v4333_v41 = vld [vmem:[#allocation5 + $0x18c] ss:$16 sps:$4 sm:$0xff]  }
  0xd1   :  { %1986 = vmatpush1.bf16.msra.mxu1 %v4268_v44  ;;  %1934 = vmatprep.subr.bf16.mxu0 %v4273_v52  ;;  %v4336_v44 = vld [vmem:[#allocation5 + $0x38c] ss:$16 sps:$4 sm:$0xff]   ;;  %v4337_v52 = vld [vmem:[#allocation5 + $0x168] ss:$16 sps:$4 sm:$0xff]  }
  0xd2   :  { %1987 = vmatprep.subr.bf16.mxu1 %v4276_v55  ;;  %1868 = vmatprep.mubr.bf16.mxu0 %v4890_v58  ;;  %v4340_v55 = vld [vmem:[#allocation5 + $0x368] ss:$16 sps:$4 sm:$0xff]  }
  0xd3   :  { %1921 = vmatprep.mubr.bf16.mxu1 %v4892_v61 }
  0xd4   :  { %1935 = vmatpush1.bf16.msra.mxu0 %v4271_v56  ;;  %v4345_v56 = vld [vmem:[#allocation5 + $0x14c] ss:$16 sps:$4 sm:$0xff]  }
  0xd5   :  { %1988 = vmatpush1.bf16.msra.mxu1 %v4274_v57  ;;  %1936 = vmatprep.subr.bf16.mxu0 %v4279_v62  ;;  %v4348_v57 = vld [vmem:[#allocation5 + $0x34c] ss:$16 sps:$4 sm:$0xff]  }
  0xd6   :  { %1989 = vmatprep.subr.bf16.mxu1 %v4282_v3  ;;  %v4351_v62 = vld [vmem:[#allocation5 + $0x12c] ss:$16 sps:$4 sm:$0xff]   ;;  %v4352_v3 = vld [vmem:[#allocation5 + $0x328] ss:$16 sps:$4 sm:$0xff]  }
  0xd7   :  { %1869 = vmatmul.mubr.bf16.gmra.mxu0 %v4898_v4 }
  0xd8   :  { %1922 = vmatmul.mubr.bf16.gmra.mxu1 %v4900_v7  ;;  %1937 = vmatpush1.bf16.msra.mxu0 %v4277_v5  ;;  %v4357_v5 = vld [vmem:[#allocation5 + $0x10c] ss:$16 sps:$4 sm:$0xff]  }
  0xd9   :  { %1990 = vmatpush1.bf16.msra.mxu1 %v4280_v6  ;;  %1938 = vmatprep.subr.bf16.mxu0 %v4285_v8  ;;  %v4360_v6 = vld [vmem:[#allocation5 + $0x30c] ss:$16 sps:$4 sm:$0xff]   ;;  %v4355_v8 = vld [vmem:[#allocation5 + $0x108] ss:$16 sps:$4 sm:$0xff]  }
  0xda   :  { %1991 = vmatprep.subr.bf16.mxu1 %v4288_v9  ;;  %1964 = vmatprep.mubr.bf16.mxu0 %v4856_v53  ;;  %v4304_v53 = vld [vmem:[#allocation5 + $0x228] ss:$16 sps:$4 sm:$0xff]  }
  0xdb   :  { %2017 = vmatprep.mubr.bf16.mxu1 %v4858_v54  ;;  %v4309_v54 = vld [vmem:[#allocation5 + $0xc] ss:$16 sps:$4 sm:$0xff]   ;;  %v4358_v9 = vld [vmem:[#allocation5 + $0x308] ss:$16 sps:$4 sm:$0xff]  }
  0xdc   :  { %1939 = vmatpush1.bf16.msra.mxu0 %v4283_v10  ;;  %v4363_v10 = vld [vmem:[#allocation5 + $0x4ec] ss:$16 sps:$4 sm:$0xff]  }
  0xdd   :  { %1992 = vmatpush1.bf16.msra.mxu1 %v4286_v11  ;;  %1940 = vmatprep.subr.bf16.mxu0 %v4291_v14  ;;  %v4366_v11 = vld [vmem:[#allocation5 + $0x6ec] ss:$16 sps:$4 sm:$0xff]   ;;  %v4361_v14 = vld [vmem:[#allocation5 + $0x4e8] ss:$16 sps:$4 sm:$0xff]  }
  0xde   :  { %1993 = vmatprep.subr.bf16.mxu1 %v4294_v15  ;;  %v4364_v15 = vld [vmem:[#allocation5 + $0x6e8] ss:$16 sps:$4 sm:$0xff]  }
  0xe0   :  { %1941 = vmatpush1.bf16.msra.mxu0 %v4289_v16  ;;  %v4369_v16 = vld [vmem:[#allocation5 + $0x4cc] ss:$16 sps:$4 sm:$0xff]  }
  0xe1   :  { %1994 = vmatpush1.bf16.msra.mxu1 %v4292_v17  ;;  %1942 = vmatprep.subr.bf16.mxu0 %v4297_v18  ;;  %v4372_v17 = vld [vmem:[#allocation5 + $0x6cc] ss:$16 sps:$4 sm:$0xff]   ;;  %v4367_v18 = vld [vmem:[#allocation5 + $0x4c8] ss:$16 sps:$4 sm:$0xff]  }
  0xe2   :  { %1995 = vmatprep.subr.bf16.mxu1 %v4300_v19  ;;  %v4370_v19 = vld [vmem:[#allocation5 + $0x6c8] ss:$16 sps:$4 sm:$0xff]  }
  0xe4   :  { %1943 = vmatpush1.bf16.msra.mxu0 %v4295_v20  ;;  %v4375_v20 = vld [vmem:[#allocation5 + $0x4ac] ss:$16 sps:$4 sm:$0xff]  }
  0xe5   :  { %1996 = vmatpush1.bf16.msra.mxu1 %v4298_v21  ;;  %1944 = vmatprep.subr.bf16.mxu0 %v4303_v22  ;;  %v4378_v21 = vld [vmem:[#allocation5 + $0x6ac] ss:$16 sps:$4 sm:$0xff]   ;;  %v4373_v22 = vld [vmem:[#allocation5 + $0x4a8] ss:$16 sps:$4 sm:$0xff]  }
  0xe6   :  { %1997 = vmatprep.subr.bf16.mxu1 %v4306_v23  ;;  %v4376_v23 = vld [vmem:[#allocation5 + $0x6a8] ss:$16 sps:$4 sm:$0xff]  }
  0xe8   :  { %1945 = vmatpush1.bf16.msra.mxu0 %v4301_v24  ;;  %v4379_v24 = vld [vmem:[#allocation5 + $0x488] ss:$16 sps:$4 sm:$0xff]  }
  0xe9   :  { %1998 = vmatpush1.bf16.msra.mxu1 %v4304_v53  ;;  %1946 = vmatprep.subr.bf16.mxu0 %v4309_v54  ;;  %v4382_v53 = vld [vmem:[#allocation5 + $0x688] ss:$16 sps:$4 sm:$0xff]   ;;  %v4387_v54 = vld [vmem:[#allocation5 + $0x46c] ss:$16 sps:$4 sm:$0xff]  }
  0xea   :  { %1999 = vmatprep.subr.bf16.mxu1 %v4312_v25  ;;  %v4388_v25 = vld [vmem:[#allocation5 + $0x668] ss:$16 sps:$4 sm:$0xff]  }
  0xec   :  { %1947 = vmatpush1.bf16.msra.mxu0 %v4307_v26  ;;  %v4393_v26 = vld [vmem:[#allocation5 + $0x44c] ss:$16 sps:$4 sm:$0xff]  }
  0xed   :  { %2000 = vmatpush1.bf16.msra.mxu1 %v4310_v27  ;;  %1948 = vmatprep.subr.bf16.mxu0 %v4315_v28  ;;  %v4391_v27 = vld [vmem:[#allocation5 + $0x448] ss:$16 sps:$4 sm:$0xff]   ;;  %v4399_v28 = vld [vmem:[#allocation5 + $0x42c] ss:$16 sps:$4 sm:$0xff]  }
  0xee   :  { %2001 = vmatprep.subr.bf16.mxu1 %v4318_v29  ;;  %v4402_v29 = vld [vmem:[#allocation5 + $0x62c] ss:$16 sps:$4 sm:$0xff]  }
  0xf0   :  { %1949 = vmatpush2.bf16.msra.mxu0 %v4313_v30  ;;  %v4397_v30 = vld [vmem:[#allocation5 + $0x428] ss:$16 sps:$4 sm:$0xff]  }
  0xf1   :  { %2002 = vmatpush2.bf16.msra.mxu1 %v4316_v31  ;;  %1950 = vmatprep.subr.bf16.mxu0 %v4321_v32  ;;  %v4400_v31 = vld [vmem:[#allocation5 + $0x628] ss:$16 sps:$4 sm:$0xff]   ;;  %v4405_v32 = vld [vmem:[#allocation5 + $0x40c] ss:$16 sps:$4 sm:$0xff]  }
  0xf2   :  { %2003 = vmatprep.subr.bf16.mxu1 %v4324_v33  ;;  %v4406_v33 = vld [vmem:[#allocation5 + $0x608] ss:$16 sps:$4 sm:$0xff]  }
  0xf4   :  { %1951 = vmatpush2.bf16.msra.mxu0 %v4319_v34  ;;  %v4411_v34 = vld [vmem:[#allocation5 + $0x5ec] ss:$16 sps:$4 sm:$0xff]  }
  0xf5   :  { %2004 = vmatpush2.bf16.msra.mxu1 %v4322_v35  ;;  %1952 = vmatprep.subr.bf16.mxu0 %v4327_v36  ;;  %v4414_v35 = vld [vmem:[#allocation5 + $0x7ec] ss:$16 sps:$4 sm:$0xff]   ;;  %v4409_v36 = vld [vmem:[#allocation5 + $0x5e8] ss:$16 sps:$4 sm:$0xff]  }
  0xf6   :  { %2005 = vmatprep.subr.bf16.mxu1 %v4330_v38  ;;  %v4412_v38 = vld [vmem:[#allocation5 + $0x7e8] ss:$16 sps:$4 sm:$0xff]  }
  0xf8   :  { %1953 = vmatpush2.bf16.msra.mxu0 %v4325_v39  ;;  %v4417_v39 = vld [vmem:[#allocation5 + $0x5cc] ss:$16 sps:$4 sm:$0xff]  }
  0xf9   :  { %2006 = vmatpush2.bf16.msra.mxu1 %v4328_v40  ;;  %1954 = vmatprep.subr.bf16.mxu0 %v4333_v41  ;;  %v4420_v40 = vld [vmem:[#allocation5 + $0x7cc] ss:$16 sps:$4 sm:$0xff]   ;;  %v4415_v41 = vld [vmem:[#allocation5 + $0x5c8] ss:$16 sps:$4 sm:$0xff]  }
  0xfa   :  { %2007 = vmatprep.subr.bf16.mxu1 %v4336_v44  ;;  %v4418_v44 = vld [vmem:[#allocation5 + $0x7c8] ss:$16 sps:$4 sm:$0xff]  }
  0xfc   :  { %1955 = vmatpush2.bf16.msra.mxu0 %v4331_v45  ;;  %v4423_v45 = vld [vmem:[#allocation5 + $0x5ac] ss:$16 sps:$4 sm:$0xff]  }
  0xfd   :  { %2008 = vmatpush2.bf16.msra.mxu1 %v4334_v46  ;;  %1956 = vmatprep.subr.bf16.mxu0 %v4339_v50  ;;  %v4426_v46 = vld [vmem:[#allocation5 + $0x7ac] ss:$16 sps:$4 sm:$0xff]   ;;  %v4421_v50 = vld [vmem:[#allocation5 + $0x5a8] ss:$16 sps:$4 sm:$0xff]  }
  0xfe   :  { %2009 = vmatprep.subr.bf16.mxu1 %v4342_v51  ;;  %v4424_v51 = vld [vmem:[#allocation5 + $0x7a8] ss:$16 sps:$4 sm:$0xff]  }
 0x100   :  { %1957 = vmatpush2.bf16.msra.mxu0 %v4337_v52  ;;  %v4429_v52 = vld [vmem:[#allocation5 + $0x58c] ss:$16 sps:$4 sm:$0xff]  }
 0x101   :  { %2010 = vmatpush2.bf16.msra.mxu1 %v4340_v55  ;;  %1958 = vmatprep.subr.bf16.mxu0 %v4345_v56  ;;  %v4432_v55 = vld [vmem:[#allocation5 + $0x78c] ss:$16 sps:$4 sm:$0xff]   ;;  %v4427_v56 = vld [vmem:[#allocation5 + $0x588] ss:$16 sps:$4 sm:$0xff]  }
 0x102   :  { %2011 = vmatprep.subr.bf16.mxu1 %v4348_v57  ;;  %v4430_v57 = vld [vmem:[#allocation5 + $0x788] ss:$16 sps:$4 sm:$0xff]  }
 0x104   :  { %1959 = vmatpush2.bf16.msra.mxu0 %v4343_v59  ;;  %v4435_v59 = vld [vmem:[#allocation5 + $0x56c] ss:$16 sps:$4 sm:$0xff]  }
 0x105   :  { %2012 = vmatpush2.bf16.msra.mxu1 %v4346_v60  ;;  %1960 = vmatprep.subr.bf16.mxu0 %v4351_v62  ;;  %v4438_v60 = vld [vmem:[#allocation5 + $0x76c] ss:$16 sps:$4 sm:$0xff]   ;;  %v4433_v62 = vld [vmem:[#allocation5 + $0x568] ss:$16 sps:$4 sm:$0xff]  }
 0x106   :  { %2013 = vmatprep.subr.bf16.mxu1 %v4354_v1  ;;  %v4436_v1 = vld [vmem:[#allocation5 + $0x768] ss:$16 sps:$4 sm:$0xff]  }
 0x108   :  { %1961 = vmatpush2.bf16.msra.mxu0 %v4349_v2  ;;  %v4441_v2 = vld [vmem:[#allocation5 + $0x54c] ss:$16 sps:$4 sm:$0xff]  }
 0x109   :  { %2014 = vmatpush2.bf16.msra.mxu1 %v4352_v3  ;;  %1962 = vmatprep.subr.bf16.mxu0 %v4357_v5  ;;  %v4444_v3 = vld [vmem:[#allocation5 + $0x74c] ss:$16 sps:$4 sm:$0xff]   ;;  %v4439_v5 = vld [vmem:[#allocation5 + $0x548] ss:$16 sps:$4 sm:$0xff]  }
 0x10a   :  { %2015 = vmatprep.subr.bf16.mxu1 %v4360_v6  ;;  %v4442_v6 = vld [vmem:[#allocation5 + $0x748] ss:$16 sps:$4 sm:$0xff]  }
 0x10c   :  { %1963 = vmatpush2.bf16.msra.mxu0 %v4355_v8  ;;  %v4447_v8 = vld [vmem:[#allocation5 + $0x52c] ss:$16 sps:$4 sm:$0xff]  }
 0x10d   :  { %2016 = vmatpush2.bf16.msra.mxu1 %v4358_v9  ;;  %2038 = vmatprep.subr.bf16.mxu0 %v4363_v10  ;;  %v4450_v9 = vld [vmem:[#allocation5 + $0x72c] ss:$16 sps:$4 sm:$0xff]   ;;  %v4445_v10 = vld [vmem:[#allocation5 + $0x528] ss:$16 sps:$4 sm:$0xff]  }
 0x10e   :  { %2091 = vmatprep.subr.bf16.mxu1 %v4366_v11  ;;  %v4448_v11 = vld [vmem:[#allocation5 + $0x728] ss:$16 sps:$4 sm:$0xff]  }
 0x10f   :  { %1965 = vmatmul.mubr.bf16.vlgmr.msra.gmra.mxu0 %v4862_v12  ;;  %v4381_v12 = vld [vmem:[#allocation5 + $0x48c] ss:$16 sps:$4 sm:$0xff]  }
 0x110   :  { %2018 = vmatmul.mubr.bf16.vlgmr.msra.gmra.mxu1 %v4864_v13  ;;  %2039 = vmatpush1.bf16.msra.mxu0 %v4361_v14  ;;  %v4384_v13 = vld [vmem:[#allocation5 + $0x68c] ss:$16 sps:$4 sm:$0xff]  }
 0x111   :  { %2092 = vmatpush1.bf16.msra.mxu1 %v4364_v15  ;;  %2040 = vmatprep.subr.bf16.mxu0 %v4369_v16  ;;  %v4453_v14 = vld [vmem:[#allocation5 + $0x50c] ss:$16 sps:$4 sm:$0xff]   ;;  %v4451_v16 = vld [vmem:[#allocation5 + $0x508] ss:$16 sps:$4 sm:$0xff]  }
 0x112   :  { %2093 = vmatprep.subr.bf16.mxu1 %v4372_v17  ;;  %1974 = vmatprep.mubr.bf16.mxu0 %v4868_v37  ;;  %v4390_v37 = vld [vmem:[#allocation5 + $0x66c] ss:$16 sps:$4 sm:$0xff]   ;;  %v4454_v17 = vld [vmem:[#allocation5 + $0x708] ss:$16 sps:$4 sm:$0xff]  }
 0x113   :  { %2027 = vmatprep.mubr.bf16.mxu1 %v4872_v43  ;;  %v4385_v43 = vld [vmem:[#allocation5 + $0x468] ss:$16 sps:$4 sm:$0xff]   ;;  %v4456_v15 = vld [vmem:[#allocation5 + $0x70c] ss:$16 sps:$4 sm:$0xff]  }
 0x114   :  { %2041 = vmatpush1.bf16.msra.mxu0 %v4367_v18  ;;  %v4459_v18 = vld [vmem:[#allocation8 + $0xac] ss:$12 sps:$4 sm:$0xff]  }
 0x115   :  { %2094 = vmatpush1.bf16.msra.mxu1 %v4370_v19  ;;  %2042 = vmatprep.subr.bf16.mxu0 %v4375_v20  ;;  %v4457_v19 = vld [vmem:[#allocation8 + $0xa8] ss:$12 sps:$4 sm:$0xff]  }
 0x116   :  { %2095 = vmatprep.subr.bf16.mxu1 %v4378_v21  ;;  %v4462_v20 = vld [vmem:[#allocation8 + $0x94] ss:$12 sps:$4 sm:$0xff]   ;;  %v4460_v21 = vld [vmem:[#allocation8 + $0x90] ss:$12 sps:$4 sm:$0xff]  }
 0x117   :  { %1975 = vmatmul.mubr.bf16.gmra.mxu0 %v4870_v42  ;;  %v4396_v42 = vld [vmem:[#allocation5 + $0x64c] ss:$16 sps:$4 sm:$0xff]  }
 0x118   :  { %2028 = vmatmul.mubr.bf16.gmra.mxu1 %v4877_v49  ;;  %2043 = vmatpush1.bf16.msra.mxu0 %v4373_v22  ;;  %v4394_v49 = vld [vmem:[#allocation5 + $0x648] ss:$16 sps:$4 sm:$0xff]   ;;  %v4465_v22 = vld [vmem:[#allocation8 + $0x7c] ss:$12 sps:$4 sm:$0xff]  }
 0x119   :  { %2096 = vmatpush1.bf16.msra.mxu1 %v4376_v23  ;;  %2044 = vmatprep.subr.bf16.mxu0 %v4381_v12  ;;  %v4463_v23 = vld [vmem:[#allocation8 + $0x78] ss:$12 sps:$4 sm:$0xff]  }
 0x11a   :  { %2097 = vmatprep.subr.bf16.mxu1 %v4384_v13  ;;  %2070 = vmatprep.mubr.bf16.mxu0 %v4880_v63  ;;  %v4408_v63 = vld [vmem:[#allocation5 + $0x60c] ss:$16 sps:$4 sm:$0xff]   ;;  %v4468_v12 = vld [vmem:[#allocation8 + $0x64] ss:$12 sps:$4 sm:$0xff]  }
 0x11b   :  { %2123 = vmatprep.mubr.bf16.mxu1 %v4882_v0  ;;  %v4403_v0 = vld [vmem:[#allocation5 + $0x408] ss:$16 sps:$4 sm:$0xff]  }
 0x11c   :  { %2045 = vmatpush1.bf16.msra.mxu0 %v4379_v24  ;;  %v4521_v13 = vld [vmem:[#allocation8 + $0x228] ss:$12 sps:$4 sm:$0xff]  }
 0x11d   :  { %2098 = vmatpush1.bf16.msra.mxu1 %v4382_v53  ;;  %2046 = vmatprep.subr.bf16.mxu0 %v4387_v54  ;;  %v4526_v24 = vld [vmem:[#allocation8 + $0x214] ss:$12 sps:$4 sm:$0xff]   ;;  %v4529_v53 = vld [vmem:[#allocation8 + $0x1fc] ss:$12 sps:$4 sm:$0xff]  }
 0x11e   :  { %2099 = vmatprep.subr.bf16.mxu1 %v4390_v37  ;;  %v4469_v54 = vld [vmem:[#allocation8 + $0x48] ss:$12 sps:$4 sm:$0xff]  }
 0x11f   :  { %v4474_v37 = vld [vmem:[#allocation8 + $0x34] ss:$12 sps:$4 sm:$0xff]  }
 0x120   :  { %2047 = vmatpush1.bf16.msra.mxu0 %v4385_v43  ;;  %v4472_v43 = vld [vmem:[#allocation8 + $0x30] ss:$12 sps:$4 sm:$0xff]  }
 0x121   :  { %2100 = vmatpush1.bf16.msra.mxu1 %v4388_v25  ;;  %2048 = vmatprep.subr.bf16.mxu0 %v4393_v26  ;;  %v4477_v25 = vld [vmem:[#allocation8 + $0x1c] ss:$12 sps:$4 sm:$0xff]   ;;  %v4530_v26 = vld [vmem:[#allocation8 + $0x1e0] ss:$12 sps:$4 sm:$0xff]  }
 0x122   :  { %2101 = vmatprep.subr.bf16.mxu1 %v4396_v42  ;;  %v4535_v42 = vld [vmem:[#allocation8 + $0x1cc] ss:$12 sps:$4 sm:$0xff]  }
 0x124   :  { %2049 = vmatpush1.bf16.msra.mxu0 %v4391_v27  ;;  %v4475_v27 = vld [vmem:[#allocation8 + $0x18] ss:$12 sps:$4 sm:$0xff]  }
 0x125   :  { %2102 = vmatpush1.bf16.msra.mxu1 %v4394_v49  ;;  %2050 = vmatprep.subr.bf16.mxu0 %v4399_v28  ;;  %v4480_v49 = vld [vmem:[#allocation8 + $0x4] ss:$12 sps:$4 sm:$0xff]   ;;  %v4533_v28 = vld [vmem:[#allocation8 + $0x1c8] ss:$12 sps:$4 sm:$0xff]  }
 0x126   :  { %2103 = vmatprep.subr.bf16.mxu1 %v4402_v29  ;;  %v4538_v29 = vld [vmem:[#allocation8 + $0x1b4] ss:$12 sps:$4 sm:$0xff]  }
 0x128   :  { %2051 = vmatpush1.bf16.msra.mxu0 %v4397_v30  ;;  %v4478_v30 = vld [vmem:[#allocation8] ss:$12 sps:$4 sm:$0xff]  }
 0x129   :  { %2104 = vmatpush1.bf16.msra.mxu1 %v4400_v31  ;;  %2052 = vmatprep.subr.bf16.mxu0 %v4405_v32  ;;  %v4483_v31 = vld [vmem:[#allocation8 + $0x16c] ss:$12 sps:$4 sm:$0xff]   ;;  %v4536_v32 = vld [vmem:[#allocation8 + $0x1b0] ss:$12 sps:$4 sm:$0xff]  }
 0x12a   :  { %2105 = vmatprep.subr.bf16.mxu1 %v4408_v63  ;;  %v4541_v63 = vld [vmem:[#allocation8 + $0x19c] ss:$12 sps:$4 sm:$0xff]  }
 0x12c   :  { %2053 = vmatpush1.bf16.msra.mxu0 %v4403_v0  ;;  %v4481_v0 = vld [vmem:[#allocation8 + $0x168] ss:$12 sps:$4 sm:$0xff]  }
 0x12d   :  { %2106 = vmatpush1.bf16.msra.mxu1 %v4406_v33  ;;  %2054 = vmatprep.subr.bf16.mxu0 %v4411_v34  ;;  %v4486_v33 = vld [vmem:[#allocation8 + $0x154] ss:$12 sps:$4 sm:$0xff]   ;;  %v4539_v34 = vld [vmem:[#allocation8 + $0x198] ss:$12 sps:$4 sm:$0xff]  }
 0x12e   :  { %2107 = vmatprep.subr.bf16.mxu1 %v4414_v35  ;;  %v4544_v35 = vld [vmem:[#allocation8 + $0x184] ss:$12 sps:$4 sm:$0xff]  }
 0x130   :  { %2055 = vmatpush2.bf16.msra.mxu0 %v4409_v36  ;;  %v4484_v36 = vld [vmem:[#allocation8 + $0x150] ss:$12 sps:$4 sm:$0xff]  }
 0x131   :  { %2108 = vmatpush2.bf16.msra.mxu1 %v4412_v38  ;;  %2056 = vmatprep.subr.bf16.mxu0 %v4417_v39  ;;  %v4489_v38 = vld [vmem:[#allocation8 + $0x13c] ss:$12 sps:$4 sm:$0xff]  }
 0x132   :  { %2109 = vmatprep.subr.bf16.mxu1 %v4420_v40 }
 0x134   :  { %2057 = vmatpush2.bf16.msra.mxu0 %v4415_v41  ;;  %v4542_v41 = vld [vmem:[#allocation8 + $0x180] ss:$12 sps:$4 sm:$0xff]  }
 0x135   :  { %2110 = vmatpush2.bf16.msra.mxu1 %v4418_v44  ;;  %2058 = vmatprep.subr.bf16.mxu0 %v4423_v45  ;;  %v4547_v44 = vld [vmem:[#allocation8 + $0x2ec] ss:$12 sps:$4 sm:$0xff]  }
 0x136   :  { %2111 = vmatprep.subr.bf16.mxu1 %v4426_v46  ;;  %v4487_v45 = vld [vmem:[#allocation8 + $0x138] ss:$12 sps:$4 sm:$0xff]  }
 0x137   :  { %v4492_v46 = vld [vmem:[#allocation8 + $0x124] ss:$12 sps:$4 sm:$0xff]  }
 0x138   :  { %2059 = vmatpush2.bf16.msra.mxu0 %v4421_v50 }
 0x139   :  { %2112 = vmatpush2.bf16.msra.mxu1 %v4424_v51  ;;  %2060 = vmatprep.subr.bf16.mxu0 %v4429_v52  ;;  %v4545_v52 = vld [vmem:[#allocation8 + $0x2e8] ss:$12 sps:$4 sm:$0xff]  }
 0x13a   :  { %2113 = vmatprep.subr.bf16.mxu1 %v4432_v55  ;;  %v4550_v55 = vld [vmem:[#allocation8 + $0x2d4] ss:$12 sps:$4 sm:$0xff]  }
 0x13c   :  { %2061 = vmatpush2.bf16.msra.mxu0 %v4427_v56  ;;  %v4490_v56 = vld [vmem:[#allocation8 + $0x120] ss:$12 sps:$4 sm:$0xff]  }
 0x13d   :  { %2114 = vmatpush2.bf16.msra.mxu1 %v4430_v57  ;;  %2062 = vmatprep.subr.bf16.mxu0 %v4435_v59  ;;  %v4495_v57 = vld [vmem:[#allocation8 + $0x10c] ss:$12 sps:$4 sm:$0xff]  }
 0x13e   :  { %2115 = vmatprep.subr.bf16.mxu1 %v4438_v60 }
 0x140   :  { %2063 = vmatpush2.bf16.msra.mxu0 %v4433_v62  ;;  %v4548_v62 = vld [vmem:[#allocation8 + $0x2d0] ss:$12 sps:$4 sm:$0xff]  }
 0x141   :  { %2116 = vmatpush2.bf16.msra.mxu1 %v4436_v1  ;;  %2064 = vmatprep.subr.bf16.mxu0 %v4441_v2  ;;  %v420_v1 = vlaneseq  ;;  %v4553_v2 = vld [vmem:[#allocation8 + $0x2bc] ss:$12 sps:$4 sm:$0xff]  }
 0x142   :  { %2117 = vmatprep.subr.bf16.mxu1 %v4444_v3  ;;  %v4493_v3 = vld [vmem:[#allocation8 + $0x108] ss:$12 sps:$4 sm:$0xff]  }
 0x144   :  { %2065 = vmatpush2.bf16.msra.mxu0 %v4439_v5  ;;  %v4498_v5 = vld [vmem:[#allocation8 + $0xf4] ss:$12 sps:$4 sm:$0xff]  }
 0x145   :  { %2118 = vmatpush2.bf16.msra.mxu1 %v4442_v6  ;;  %2066 = vmatprep.subr.bf16.mxu0 %v4447_v8 }
 0x146   :  { %2119 = vmatprep.subr.bf16.mxu1 %v4450_v9  ;;  %v4551_v9 = vld [vmem:[#allocation8 + $0x2b8] ss:$12 sps:$4 sm:$0xff]  }
 0x148   :  { %2067 = vmatpush2.bf16.msra.mxu0 %v4445_v10  ;;  %v4928_v10 = vshrl.u32 %v420_v1, 7 }
 0x149   :  { %2120 = vmatpush2.bf16.msra.mxu1 %v4448_v11  ;;  %2068 = vmatprep.subr.bf16.mxu0 %v4453_v14  ;;  %v4556_v11 = vld [vmem:[#allocation8 + $0x2a4] ss:$12 sps:$4 sm:$0xff]  }
 0x14a   :  { %2121 = vmatprep.subr.bf16.mxu1 %v4456_v15 }
 0x14c   :  { %2069 = vmatpush2.bf16.msra.mxu0 %v4451_v16  ;;  %v4496_v16 = vld [vmem:[#allocation8 + $0xf0] ss:$12 sps:$4 sm:$0xff]  }
 0x14d   :  { %2122 = vmatpush2.bf16.msra.mxu1 %v4454_v17  ;;  %2825 = vmatprep.subr.bf16.mxu0 %v4459_v18  ;;  %v4501_v17 = vld [vmem:[#allocation8 + $0xdc] ss:$12 sps:$4 sm:$0xff]   ;;  %v4554_v18 = vld [vmem:[#allocation8 + $0x2a0] ss:$12 sps:$4 sm:$0xff]  }
 0x14f   :  { %2071 = vmatmul.mubr.bf16.vlgmr.msra.gmra.mxu0 %v4886_v47  ;;  %v4523_v47 = vld [vmem:[#allocation8 + $0x22c] ss:$12 sps:$4 sm:$0xff]   ;;  %v4920_v39 = vpop.f32.mrf.mxu0 }
 0x150   :  { %2124 = vmatmul.mubr.bf16.vlgmr.msra.gmra.mxu1 %v4888_v48  ;;  %2080 = vmatprep.mubr.bf16.mxu0 %v4890_v58  ;;  %v4466_v48 = vld [vmem:[#allocation8 + $0x60] ss:$12 sps:$4 sm:$0xff]   ;;  %v4922_v40 = vpop.f32.mrf.mxu1 }
 0x151   :  { %2133 = vmatprep.mubr.bf16.mxu1 %v4892_v61  ;;  %2826 = vmatpush1.bf16.msra.mxu0 %v4457_v19  ;;  %v4471_v58 = vld [vmem:[#allocation8 + $0x4c] ss:$12 sps:$4 sm:$0xff]   ;;  %v4524_v61 = vld [vmem:[#allocation8 + $0x210] ss:$12 sps:$4 sm:$0xff]   ;;  %v1756_v50 = vpop.f32.mrf.mxu0  ;;  %v426_v19 = vsub.s32 1, %v4928_v10 }
 0x152   :  { %2827 = vmatprep.subr.bf16.mxu0 %v4462_v20  ;;  %2878 = vmatprep.subr.bf16.mxu1 %v4523_v47  ;;  %v4924_v51 = vpop.f32.mrf.mxu1  ;;  %v4559_v20 = vld [vmem:[#allocation8 + $0x28c] ss:$12 sps:$4 sm:$0xff]   ;;  %v4504_v47 = vld [vmem:[#allocation8 + $0xc4] ss:$12 sps:$4 sm:$0xff]  }
 0x153   :  { %2879 = vmatpush1.bf16.msra.mxu1 %v4521_v13  ;;  %v1758_v59 = vpop.f32.mrf.mxu0  ;;  %v4499_v13 = vld [vmem:[#allocation8 + $0xd8] ss:$12 sps:$4 sm:$0xff]  }
 0x154   :  { %2880 = vmatprep.subr.bf16.mxu1 %v4526_v24  ;;  %v4926_v60 = vpop.f32.mrf.mxu1 }
 0x155   :  { %2828 = vmatpush1.bf16.msra.mxu0 %v4460_v21  ;;  %v1760_v6 = vpop.f32.mrf.mxu0  ;;  %v4933_v21 = vld [vmem:[#allocation7] sm:$0xf] }
 0x156   :  { %2829 = vmatprep.subr.bf16.mxu0 %v4465_v22  ;;  %v1813_v8 = vpop.f32.mrf.mxu1  ;;  %v422_v22 = vsub.s32 0, %v4928_v10  ;;  %v427_v24 = vrot.slane %v4933_v21, %v426_v19 }
 0x157   :  { %2081 = vmatmul.mubr.bf16.gmra.mxu0 %v4898_v4  ;;  %2881 = vmatpush1.bf16.msra.mxu1 %v4524_v61  ;;  %v4527_v4 = vld [vmem:[#allocation8 + $0x1f8] ss:$12 sps:$4 sm:$0xff]   ;;  %v1764_v14 = vpop.f32.mrf.mxu0 }
 0x158   :  { %2134 = vmatmul.mubr.bf16.gmra.mxu1 %v4900_v7  ;;  %2882 = vmatprep.subr.bf16.mxu1 %v4529_v53  ;;  %v4532_v7 = vld [vmem:[#allocation8 + $0x1e4] ss:$12 sps:$4 sm:$0xff]   ;;  %v4930_v15 = vpop.f32.mrf.mxu1 }
 0x159   :  { %2830 = vmatpush1.bf16.msra.mxu0 %v4463_v23  ;;  %v1766_v23 = vpop.f32.mrf.mxu0 }
 0x15a   :  { %2831 = vmatprep.subr.bf16.mxu0 %v4468_v12  ;;  %v1819_v12 = vpop.f32.mrf.mxu1 }
 0x15b   :  { %2883 = vmatpush1.bf16.msra.mxu1 %v4527_v4  ;;  %v1768_v61 = vpop.f32.mrf.mxu0  ;;  %v1757_v4 = vadd.f32 %v1756_v50, %v427_v24  ;;  %v4565_v50 = vld [vmem:[#allocation8 + $0x25c] ss:$12 sps:$4 sm:$0xff]  }
 0x15c   :  { %2884 = vmatprep.subr.bf16.mxu1 %v4532_v7  ;;  %v1821_v53 = vpop.f32.mrf.mxu1 }
 0x15d   :  { %2832 = vmatpush1.bf16.msra.mxu0 %v4466_v48  ;;  %v4557_v48 = vld [vmem:[#allocation8 + $0x288] ss:$12 sps:$4 sm:$0xff]  }
 0x15e   :  { %2833 = vmatprep.subr.bf16.mxu0 %v4471_v58  ;;  %v423_v58 = vrot.slane %v4933_v21, %v422_v22 }
 0x15f   :  { %2885 = vmatpush1.bf16.msra.mxu1 %v4530_v26 }
 0x160   :  { %2886 = vmatprep.subr.bf16.mxu1 %v4535_v42  ;;  %v1755_v7 = vadd.f32 %v4920_v39, %v423_v58  ;;  %v1759_v26 = vadd.f32 %v1758_v59, %v423_v58  ;;  %v1767_v39 = vadd.f32 %v1766_v23, %v427_v24 }
 0x161   :  { %2834 = vmatpush1.bf16.msra.mxu0 %v4469_v54  ;;  %v4502_v54 = vld [vmem:[#allocation8 + $0xc0] ss:$12 sps:$4 sm:$0xff]  }
 0x162   :  { %2835 = vmatprep.subr.bf16.mxu0 %v4474_v37  ;;  %v4505_v37 = vld [vmem:[#allocation8 + $0x170] ss:$12 sps:$4 sm:$0xff]  }
 0x163   :  { %2887 = vmatpush1.bf16.msra.mxu1 %v4533_v28  ;;  %v1761_v28 = vadd.f32 %v1760_v6, %v427_v24 }
 0x164   :  { %2888 = vmatprep.subr.bf16.mxu1 %v4538_v29  ;;  %v1808_v29 = vadd.f32 %v4922_v40, %v1755_v7  ;;  %v1769_v40 = vadd.f32 %v1768_v61, %v423_v58 }
 0x165   :  { %2836 = vmatpush1.bf16.msra.mxu0 %v4472_v43  ;;  %v1770_v43 = vpop.f32.mrf.mxu0 }
 0x166   :  { %2837 = vmatprep.subr.bf16.mxu0 %v4477_v25  ;;  %v1823_v25 = vpop.f32.mrf.mxu1  ;;  %v1771_v1 = vadd.f32 %v1770_v43, %v427_v24 }
 0x167   :  { %2889 = vmatpush1.bf16.msra.mxu1 %v4536_v32  ;;  %v4562_v32 = vld [vmem:[#allocation8 + $0x274] ss:$12 sps:$4 sm:$0xff]  }
 0x168   :  { %2890 = vmatprep.subr.bf16.mxu1 %v4541_v63  ;;  %v1812_v63 = vadd.f32 %v4926_v60, %v1759_v26 }
 0x169   :  { %2838 = vmatpush1.bf16.msra.mxu0 %v4475_v27 }
 0x16a   :  { %2839 = vmatprep.subr.bf16.mxu0 %v4480_v49  ;;  %v1810_v49 = vadd.f32 %v4924_v51, %v1757_v4  ;;  %v4569_v4 = vld [vmem:[#allocation8 + $0x2f0] ss:$12 sps:$4 sm:$0xff]  }
 0x16b   :  { %2891 = vmatpush1.bf16.msra.mxu1 %v4539_v34 }
 0x16c   :  { %2892 = vmatprep.subr.bf16.mxu1 %v4544_v35 }
 0x16d   :  { %2840 = vmatpush1.bf16.msra.mxu0 %v4478_v30 }
 0x16e   :  { %2841 = vmatprep.subr.bf16.mxu0 %v4483_v31 }
 0x16f   :  { %2893 = vmatpush1.bf16.msra.mxu1 %v4542_v41 }
 0x170   :  { %2894 = vmatprep.subr.bf16.mxu1 %v4547_v44  ;;  %v1765_v44 = vadd.f32 %v1764_v14, %v423_v58  ;;  %v4506_v58 = vld [vmem:[#allocation8 + $0xb0] ss:$12 sps:$4 sm:$0xff]  }
 0x171   :  { %2842 = vmatpush2.bf16.msra.mxu0 %v4481_v0 }
 0x172   :  { %2843 = vmatprep.subr.bf16.mxu0 %v4486_v33  ;;  %v4560_v33 = vld [vmem:[#allocation8 + $0x270] ss:$12 sps:$4 sm:$0xff]  }
 0x173   :  { %2895 = vmatpush2.bf16.msra.mxu1 %v4545_v52 }
 0x174   :  { %2896 = vmatprep.subr.bf16.mxu1 %v4550_v55 }
 0x175   :  { %2844 = vmatpush2.bf16.msra.mxu0 %v4484_v36 }
 0x176   :  { %2845 = vmatprep.subr.bf16.mxu0 %v4489_v38  ;;  %v1814_v38 = vadd.f32 %v1813_v8, %v1761_v28 }
 0x177   :  { %2897 = vmatpush2.bf16.msra.mxu1 %v4548_v62  ;;  %v1820_v62 = vadd.f32 %v1819_v12, %v1767_v39  ;;  %v1824_v12 = vadd.f32 %v1823_v25, %v1771_v1  ;;  %v4517_v39 = vld [vmem:[#allocation8 + $0xe0] ss:$12 sps:$4 sm:$0xff]   ;;  %v430_v1 = vsub.s32 2, %v4928_v10 }
 0x178   :  { %2898 = vmatprep.subr.bf16.mxu1 %v4553_v2 }
 0x179   :  { %2846 = vmatpush2.bf16.msra.mxu0 %v4487_v45 }
 0x17a   :  { %2847 = vmatprep.subr.bf16.mxu0 %v4492_v46 }
 0x17b   :  { %2899 = vmatpush2.bf16.msra.mxu1 %v4551_v9  ;;  %v4568_v9 = vld [vmem:[#allocation8 + $0x244] ss:$12 sps:$4 sm:$0xff]  }
 0x17c   :  { %2900 = vmatprep.subr.bf16.mxu1 %v4556_v11  ;;  %v1822_v11 = vadd.f32 %v1821_v53, %v1769_v40 }
 0x17d   :  { %2848 = vmatpush2.bf16.msra.mxu0 %v4490_v56  ;;  %v4563_v56 = vld [vmem:[#allocation8 + $0x258] ss:$12 sps:$4 sm:$0xff]  }
 0x17e   :  { %2849 = vmatprep.subr.bf16.mxu0 %v4495_v57 }
 0x17f   :  { %2901 = vmatpush2.bf16.msra.mxu1 %v4554_v18  ;;  %v4566_v18 = vld [vmem:[#allocation8 + $0x240] ss:$12 sps:$4 sm:$0xff]  }
 0x180   :  { %2902 = vmatprep.subr.bf16.mxu1 %v4559_v20 }
 0x181   :  { %2850 = vmatpush2.bf16.msra.mxu0 %v4493_v3  ;;  %v1818_v3 = vadd.f32 %v4930_v15, %v1765_v44  ;;  %v4519_v44 = vld [vmem:[#allocation8 + $0xc8] ss:$12 sps:$4 sm:$0xff]  }
 0x182   :  { %2851 = vmatprep.subr.bf16.mxu0 %v4498_v5 }
 0x183   :  { %2903 = vmatpush2.bf16.msra.mxu1 %v4557_v48 }
 0x184   :  { %2904 = vmatprep.subr.bf16.mxu1 %v4562_v32  ;;  %v4510_v32 = vld [vmem:[#allocation8 + $0x80] ss:$12 sps:$4 sm:$0xff]  }
 0x185   :  { %2852 = vmatpush2.bf16.msra.mxu0 %v4496_v16 }
 0x186   :  { %2853 = vmatprep.subr.bf16.mxu0 %v4501_v17 }
 0x187   :  { %2905 = vmatpush2.bf16.msra.mxu1 %v4560_v33  ;;  %v4512_v33 = vld [vmem:[#allocation8 + $0x68] ss:$12 sps:$4 sm:$0xff]  }
 0x188   :  { %2906 = vmatprep.subr.bf16.mxu1 %v4565_v50 }
 0x189   :  { %2854 = vmatpush2.bf16.msra.mxu0 %v4499_v13 }
 0x18a   :  { %2855 = vmatprep.subr.bf16.mxu0 %v4504_v47 }
 0x18b   :  { %2907 = vmatpush2.bf16.msra.mxu1 %v4563_v56 }
 0x18c   :  { %2908 = vmatprep.subr.bf16.mxu1 %v4568_v9 }
 0x18d   :  { %2856 = vmatpush2.bf16.msra.mxu0 %v4502_v54 }
 0x18e   :  { %3915 = vmatprep.subr.bf16.mxu0 %v4505_v37  ;;  %v4507_v37 = vld [vmem:[#allocation8 + $0x158] ss:$12 sps:$4 sm:$0xff]  }
 0x18f   :  { %v1860_v42 = vpop.f32.mrf.mxu0  ;;  %2909 = vmatpush2.bf16.msra.mxu1 %v4566_v18 }
 0x190   :  { %v1913_v27 = vpop.f32.mrf.mxu1  ;;  %v1861_v34 = vadd.f32 %v1860_v42, %v1808_v29  ;;  %3943 = vmatprep.subr.bf16.mxu1 %v4569_v4 }
 0x191   :  { %v1862_v30 = vpop.f32.mrf.mxu0 }
 0x192   :  { %v1915_v31 = vpop.f32.mrf.mxu1  ;;  %v1863_v0 = vadd.f32 %v1862_v30, %v1810_v49  ;;  %v1914_v57 = vadd.f32 %v1913_v27, %v1861_v34  ;;  %v4508_v27 = vld [vmem:[#allocation8 + $0x98] ss:$12 sps:$4 sm:$0xff]   ;;  %v4509_v49 = vld [vmem:[#allocation8 + $0x140] ss:$12 sps:$4 sm:$0xff]   ;;  %v4513_v34 = vld [vmem:[#allocation8 + $0x110] ss:$12 sps:$4 sm:$0xff]  }
 0x193   :  { %v1864_v35 = vpop.f32.mrf.mxu0 }
 0x194   :  { %v1917_v36 = vpop.f32.mrf.mxu1  ;;  %v1865_v41 = vadd.f32 %v1864_v35, %v1812_v63  ;;  %v1916_v51 = vadd.f32 %v1915_v31, %v1863_v0  ;;  %v2144_v20 = vmax.f32 %v1914_v57, 0.0  ;;  %v4511_v0 = vld [vmem:[#allocation8 + $0x128] ss:$12 sps:$4 sm:$0xff]   ;;  %v4514_v35 = vld [vmem:[#allocation8 + $0x50] ss:$12 sps:$4 sm:$0xff]  }
 0x195   :  { %v1866_v45 = vpop.f32.mrf.mxu0 }
 0x196   :  { %v1919_v46 = vpop.f32.mrf.mxu1  ;;  %v1918_v52 = vadd.f32 %v1917_v36, %v1865_v41  ;;  %v1867_v55 = vadd.f32 %v1866_v45, %v1814_v38  ;;  %v2145_v14 = vmax.f32 %v1916_v51, 0.0  ;;  %v4515_v36 = vld [vmem:[#allocation8 + $0xf8] ss:$12 sps:$4 sm:$0xff]   ;;  %v4518_v41 = vld [vmem:[#allocation8 + $0x20] ss:$12 sps:$4 sm:$0xff]  }
 0x197   :  { %v1870_v59 = vpop.f32.mrf.mxu0  ;;  %v4516_v38 = vld [vmem:[#allocation8 + $0x38] ss:$12 sps:$4 sm:$0xff]   ;;  %v4520_v45 = vld [vmem:[#allocation8 + $0x8] ss:$12 sps:$4 sm:$0xff]  }
 0x198   :  { %v1923_v60 = vpop.f32.mrf.mxu1  ;;  %v1920_v2 = vadd.f32 %v1919_v46, %v1867_v55  ;;  %v2148_v5 = vmax.f32 %v1918_v52, 0.0  ;;  %v1871_v23 = vadd.f32 %v1870_v59, %v1818_v3 }
 0x199   :  { %v1872_v6 = vpop.f32.mrf.mxu0 }
 0x19a   :  { %v1925_v8 = vpop.f32.mrf.mxu1  ;;  %v2149_v16 = vmax.f32 %v1920_v2, 0.0  ;;  %v1873_v17 = vadd.f32 %v1872_v6, %v1820_v62  ;;  %v2160_v15 = vpack.c.bf16 %v2148_v5, %v2144_v20  ;;  %v1924_v26 = vadd.f32 %v1923_v60, %v1871_v23 }
 0x19b   :  { %v1874_v13 = vpop.f32.mrf.mxu0  ;;  %v434_v62 = vsub.s32 3, %v4928_v10  ;;  %v431_v6 = vrot.slane %v4933_v21, %v430_v1 }
 0x19c   :  { %v1927_v47 = vpop.f32.mrf.mxu1  ;;  %v2161_v48 = vpack.c.bf16 %v2149_v16, %v2145_v14  ;;  %v1875_v24 = vadd.f32 %v1874_v13, %v1822_v11  ;;  %v1926_v53 = vadd.f32 %v1925_v8, %v1873_v17  ;;  %v2152_v30 = vmax.f32 %v1924_v26, 0.0 }
 0x19d   :  { %v1876_v61 = vpop.f32.mrf.mxu0  ;;  %v435_v5 = vrot.slane %v4933_v21, %v434_v62  ;;  %v4592_v62 = vld [vmem:[#allocation10 + $0x20] sm:$0xff]  }
 0x19e   :  { %v1929_v54 = vpop.f32.mrf.mxu1  ;;  %v1877_v7 = vadd.f32 %v1876_v61, %v1824_v12  ;;  %v1928_v43 = vadd.f32 %v1927_v47, %v1875_v24  ;;  %2857 = vmatprep.mubr.bf16.mxu0 %v2161_v48  ;;  %v2153_v28 = vmax.f32 %v1926_v53, 0.0  ;;  %v4585_v12 = vld [vmem:[#allocation10 + $0x78] sm:$0xff]   ;;  %v4587_v24 = vld [vmem:[#allocation10 + $0x70] sm:$0xff]  }
 0x19f   :  { %2858 = vmatmul.mubr.bf16.vlgmr.msra.gmra.mxu0 %v2160_v15 }
 0x1a0   :  { %v1930_v42 = vadd.f32 %v1929_v54, %v1877_v7  ;;  %3916 = vmatpush3.bf16.msra.mxu0 %v4506_v58  ;;  %v2156_v25 = vmax.f32 %v1928_v43, 0.0  ;;  %v4588_v7 = vld [vmem:[#allocation10 + $0x30] sm:$0xff]  }
 0x1a1   :  { %3917 = vmatprep.subr.bf16.mxu0 %v4507_v37 }
 0x1a2   :  { %v2157_v29 = vmax.f32 %v1930_v42, 0.0  ;;  %v2164_v63 = vpack.c.bf16 %v2156_v25, %v2152_v30 }
 0x1a4   :  { %v2165_v31 = vpack.c.bf16 %v2157_v29, %v2153_v28  ;;  %3918 = vmatpush3.bf16.msra.mxu0 %v4508_v27  ;;  %v4589_v27 = vld [vmem:[#allocation10 + $0x68] sm:$0xff]  }
 0x1a5   :  { %3919 = vmatprep.subr.bf16.mxu0 %v4509_v49 }
 0x1a6   :  { %2867 = vmatprep.mubr.bf16.mxu0 %v2165_v31 }
 0x1a7   :  { %2868 = vmatmul.mubr.bf16.gmra.mxu0 %v2164_v63 }
 0x1a8   :  { %3920 = vmatpush3.bf16.msra.mxu0 %v4510_v32  ;;  %2963 = vmatprep.mubr.bf16.mxu0 %v2161_v48  ;;  %v4586_v48 = vld [vmem:[#allocation10 + $0x38] sm:$0xff]  }
 0x1a9   :  { %3921 = vmatprep.subr.bf16.mxu0 %v4511_v0 }
 0x1ac   :  { %3922 = vmatpush3.bf16.msra.mxu0 %v4512_v33 }
 0x1ad   :  { %3923 = vmatprep.subr.bf16.mxu0 %v4513_v34  ;;  %v4590_v34 = vld [vmem:[#allocation10 + $0x28] sm:$0xff]  }
 0x1b0   :  { %3924 = vmatpush3.bf16.msra.mxu0 %v4514_v35 }
 0x1b1   :  { %3925 = vmatprep.subr.bf16.mxu0 %v4515_v36 }
 0x1b4   :  { %3926 = vmatpush3.bf16.msra.mxu0 %v4516_v38 }
 0x1b5   :  { %3927 = vmatprep.subr.bf16.mxu0 %v4517_v39  ;;  %v4591_v39 = vld [vmem:[#allocation10 + $0x60] sm:$0xff]  }
 0x1b8   :  { %3928 = vmatpush3.bf16.msra.mxu0 %v4518_v41 }
 0x1b9   :  { %3929 = vmatprep.subr.bf16.mxu0 %v4519_v44 }
 0x1bc   :  { %3930 = vmatpush3.bf16.msra.mxu0 %v4520_v45 }
 0x1bd   :  { %3971 = vmatprep.subr.bf16.mxu0 %v4585_v12 }
 0x1bf   :  { %2964 = vmatmul.mubr.bf16.vlgmr.msra.gmra.mxu0 %v2160_v15 }
 0x1c0   :  { %2971 = vmatprep.mubr.bf16.mxu0 %v2165_v31  ;;  %3972 = vmatpush3.bf16.msra.mxu0 %v4586_v48  ;;  %v4573_v48 = vld [vmem:[#allocation8 + $0x2c0] ss:$12 sps:$4 sm:$0xff]  }
 0x1c1   :  { %3973 = vmatprep.subr.bf16.mxu0 %v4587_v24 }
 0x1c4   :  { %3974 = vmatpush3.bf16.msra.mxu0 %v4588_v7  ;;  %v4578_v7 = vld [vmem:[#allocation8 + $0x1d0] ss:$12 sps:$4 sm:$0xff]  }
 0x1c5   :  { %3975 = vmatprep.subr.bf16.mxu0 %v4589_v27  ;;  %v4582_v27 = vld [vmem:[#allocation8 + $0x1a0] ss:$12 sps:$4 sm:$0xff]  }
 0x1c7   :  { %2972 = vmatmul.mubr.bf16.gmra.mxu0 %v2164_v63 }
 0x1c8   :  { %3976 = vmatpush3.bf16.msra.mxu0 %v4590_v34  ;;  %v4603_v34 = vld [vmem:[#allocation10 + $0xa8] sm:$0xff]  }
 0x1c9   :  { %3977 = vmatprep.subr.bf16.mxu0 %v4591_v39  ;;  %v4607_v39 = vld [vmem:[#allocation10 + $0x88] sm:$0xff]  }
 0x1cc   :  { %3978 = vmatpush3.bf16.msra.mxu0 %v4592_v62 }
 0x1cf   :  { %v1966_v46 = vpop.f32.mrf.mxu0 }
 0x1d0   :  { %v2019_v50 = vpop.f32.mrf.mxu1  ;;  %v1967_v14 = vadd.f32 %v1966_v46, %v431_v6 }
 0x1d1   :  { %v1968_v40 = vpop.f32.mrf.mxu0 }
 0x1d2   :  { %v2021_v51 = vpop.f32.mrf.mxu1  ;;  %v1969_v11 = vadd.f32 %v1968_v40, %v435_v5  ;;  %v2020_v58 = vadd.f32 %v2019_v50, %v1967_v14 }
 0x1d3   :  { %v1970_v52 = vpop.f32.mrf.mxu0 }
 0x1d4   :  { %v2023_v55 = vpop.f32.mrf.mxu1  ;;  %v1971_v18 = vadd.f32 %v1970_v52, %v431_v6  ;;  %v2022_v13 = vadd.f32 %v2021_v51, %v1969_v11 }
 0x1d5   :  { %v1972_v56 = vpop.f32.mrf.mxu0 }
 0x1d6   :  { %v2025_v57 = vpop.f32.mrf.mxu1  ;;  %v1973_v47 = vadd.f32 %v1972_v56, %v435_v5  ;;  %v2024_v54 = vadd.f32 %v2023_v55, %v1971_v18 }
 0x1d7   :  { %v1976_v59 = vpop.f32.mrf.mxu0 }
 0x1d8   :  { %v2029_v60 = vpop.f32.mrf.mxu1  ;;  %v2026_v43 = vadd.f32 %v2025_v57, %v1973_v47  ;;  %v1977_v25 = vadd.f32 %v1976_v59, %v431_v6 }
 0x1d9   :  { %v1978_v2 = vpop.f32.mrf.mxu0 }
 0x1da   :  { %v2031_v3 = vpop.f32.mrf.mxu1  ;;  %v1979_v26 = vadd.f32 %v1978_v2, %v435_v5  ;;  %v2030_v41 = vadd.f32 %v2029_v60, %v1977_v25  ;;  %v4583_v25 = vld [vmem:[#allocation8 + $0x248] ss:$12 sps:$4 sm:$0xff]  }
 0x1db   :  { %v1980_v8 = vpop.f32.mrf.mxu0 }
 0x1dc   :  { %v2033_v9 = vpop.f32.mrf.mxu1  ;;  %v1981_v29 = vadd.f32 %v1980_v8, %v431_v6  ;;  %v2032_v35 = vadd.f32 %v2031_v3, %v1979_v26  ;;  %v4570_v6 = vld [vmem:[#allocation8 + $0x230] ss:$12 sps:$4 sm:$0xff]   ;;  %v4580_v26 = vld [vmem:[#allocation8 + $0x1b8] ss:$12 sps:$4 sm:$0xff]  }
 0x1dd   :  { %v1982_v16 = vpop.f32.mrf.mxu0  ;;  %v4593_v8 = vld [vmem:[#allocation10 + $0x58] sm:$0xff]  }
 0x1de   :  { %v2035_v17 = vpop.f32.mrf.mxu1  ;;  %v1983_v36 = vadd.f32 %v1982_v16, %v435_v5  ;;  %v2034_v50 = vadd.f32 %v2033_v9, %v1981_v29  ;;  %v4571_v16 = vld [vmem:[#allocation8 + $0x2d8] ss:$12 sps:$4 sm:$0xff]   ;;  %3979 = vmatprep.subr.bf16.mxu0 %v4593_v8  ;;  %v4596_v29 = vld [vmem:[#allocation10 + $0x10] sm:$0xff]  }
 0x1e0   :  { %v2036_v2 = vadd.f32 %v2035_v17, %v1983_v36  ;;  %v4572_v17 = vld [vmem:[#allocation8 + $0x218] ss:$12 sps:$4 sm:$0xff]  }
 0x1e1   :  { %v4605_v36 = vld [vmem:[#allocation10 + $0x98] sm:$0xff]  }
 0x20f   :  { %v2072_v20 = vpop.f32.mrf.mxu0 }
 0x210   :  { %v2125_v23 = vpop.f32.mrf.mxu1  ;;  %v2073_v21 = vadd.f32 %v2072_v20, %v2020_v58 }
 0x211   :  { %v2074_v15 = vpop.f32.mrf.mxu0 }
 0x212   :  { %v2127_v61 = vpop.f32.mrf.mxu1  ;;  %v2075_v37 = vadd.f32 %v2074_v15, %v2022_v13  ;;  %v2126_v63 = vadd.f32 %v2125_v23, %v2073_v21  ;;  %v4594_v13 = vld [vmem:[#allocation10 + $0x18] sm:$0xff]   ;;  %v4575_v21 = vld [vmem:[#allocation8 + $0x2a8] ss:$12 sps:$4 sm:$0xff]  }
 0x213   :  { %v2076_v4 = vpop.f32.mrf.mxu0  ;;  %3980 = vmatpush3.bf16.msra.mxu0 %v4594_v13 }
 0x214   :  { %v2129_v53 = vpop.f32.mrf.mxu1  ;;  %v2077_v42 = vadd.f32 %v2076_v4, %v2024_v54  ;;  %v2128_v30 = vadd.f32 %v2127_v61, %v2075_v37  ;;  %v2146_v55 = vmax.f32 %v2126_v63, 0.0  ;;  %v4574_v54 = vld [vmem:[#allocation8 + $0x200] ss:$12 sps:$4 sm:$0xff]   ;;  %v4576_v4 = vld [vmem:[#allocation8 + $0x1e8] ss:$12 sps:$4 sm:$0xff]  }
 0x215   :  { %v2078_v49 = vpop.f32.mrf.mxu0  ;;  %v4600_v63 = vld [vmem:[#allocation10] sm:$0xff]  }
 0x216   :  { %v2131_v28 = vpop.f32.mrf.mxu1  ;;  %v2130_v31 = vadd.f32 %v2129_v53, %v2077_v42  ;;  %v2079_v32 = vadd.f32 %v2078_v49, %v2026_v43  ;;  %v2147_v40 = vmax.f32 %v2128_v30, 0.0  ;;  %v4577_v53 = vld [vmem:[#allocation8 + $0x290] ss:$12 sps:$4 sm:$0xff]   ;;  %v4579_v43 = vld [vmem:[#allocation8 + $0x278] ss:$12 sps:$4 sm:$0xff]   ;;  %v4597_v30 = vld [vmem:[#allocation10 + $0x48] sm:$0xff]  }
 0x217   :  { %v2082_v0 = vpop.f32.mrf.mxu0  ;;  %v4581_v42 = vld [vmem:[#allocation8 + $0x260] ss:$12 sps:$4 sm:$0xff]   ;;  %v4584_v49 = vld [vmem:[#allocation8 + $0x188] ss:$12 sps:$4 sm:$0xff]  }
 0x218   :  { %v2135_v33 = vpop.f32.mrf.mxu1  ;;  %v2132_v38 = vadd.f32 %v2131_v28, %v2079_v32  ;;  %v2150_v44 = vmax.f32 %v2130_v31, 0.0  ;;  %v2083_v56 = vadd.f32 %v2082_v0, %v2030_v41  ;;  %v4595_v28 = vld [vmem:[#allocation10 + $0x50] sm:$0xff]   ;;  %v4598_v31 = vld [vmem:[#allocation10 + $0x8] sm:$0xff]   ;;  %v4599_v32 = vld [vmem:[#allocation10 + $0x40] sm:$0xff]  }
 0x219   :  { %v2084_v45 = vpop.f32.mrf.mxu0  ;;  %3981 = vmatprep.subr.bf16.mxu0 %v4595_v28  ;;  %v4601_v0 = vld [vmem:[#allocation10 + $0xb8] sm:$0xff]   ;;  %v4608_v41 = vld [vmem:[#allocation10 + $0x80] sm:$0xff]  }
 0x21a   :  { %v2137_v46 = vpop.f32.mrf.mxu1  ;;  %v2151_v51 = vmax.f32 %v2132_v38, 0.0  ;;  %v2085_v52 = vadd.f32 %v2084_v45, %v2032_v35  ;;  %v2162_v60 = vpack.c.bf16 %v2150_v44, %v2146_v55  ;;  %v2136_v23 = vadd.f32 %v2135_v33, %v2083_v56  ;;  %3982 = vmatpush3.bf16.msra.mxu0 %v4596_v29  ;;  %v4602_v33 = vld [vmem:[#allocation10 + $0xb0] sm:$0xff]   ;;  %v4604_v35 = vld [vmem:[#allocation10 + $0xa0] sm:$0xff]  }
 0x21b   :  { %v2086_v57 = vpop.f32.mrf.mxu0  ;;  %3983 = vmatprep.subr.bf16.mxu0 %v4597_v30  ;;  %v4606_v38 = vld [vmem:[#allocation10 + $0x90] sm:$0xff]  }
 0x21c   :  { %v2139_v59 = vpop.f32.mrf.mxu1  ;;  %v2163_v3 = vpack.c.bf16 %v2151_v51, %v2147_v40  ;;  %v2087_v5 = vadd.f32 %v2086_v57, %v2034_v50  ;;  %v2138_v9 = vadd.f32 %v2137_v46, %v2085_v52  ;;  %v2154_v15 = vmax.f32 %v2136_v23, 0.0  ;;  %v2296_v40 = vld [vmem:[%s4978_s4] sm:$0x7] }
 0x21d   :  { %v2088_v11 = vpop.f32.mrf.mxu0  ;;  %v2305_v52 = vrot.slane %v2296_v40, %v426_v19  ;;  %v2301_v55 = vrot.slane %v2296_v40, %v422_v22 }
 0x21e   :  { %v2141_v14 = vpop.f32.mrf.mxu1  ;;  %v2089_v18 = vadd.f32 %v2088_v11, %v2036_v2  ;;  %v2140_v20 = vadd.f32 %v2139_v59, %v2087_v5  ;;  %2910 = vmatprep.mubr.bf16.mxu1 %v2163_v3  ;;  %v2155_v24 = vmax.f32 %v2138_v9, 0.0  ;;  %3984 = vmatpush3.bf16.msra.mxu0 %v4598_v31 }
 0x21f   :  { %2911 = vmatmul.mubr.bf16.vlgmr.msra.gmra.mxu1 %v2162_v60  ;;  %3985 = vmatprep.subr.bf16.mxu0 %v4599_v32 }
 0x220   :  { %v2142_v47 = vadd.f32 %v2141_v14, %v2089_v18  ;;  %3944 = vmatpush3.bf16.msra.mxu1 %v4570_v6  ;;  %v2158_v12 = vmax.f32 %v2140_v20, 0.0 }
 0x221   :  { %3945 = vmatprep.subr.bf16.mxu1 %v4571_v16 }
 0x222   :  { %v2159_v58 = vmax.f32 %v2142_v47, 0.0  ;;  %v2166_v37 = vpack.c.bf16 %v2158_v12, %v2154_v15  ;;  %3986 = vmatpush3.bf16.msra.mxu0 %v4600_v63 }
 0x224   :  { %v2167_v61 = vpack.c.bf16 %v2159_v58, %v2155_v24  ;;  %3946 = vmatpush3.bf16.msra.mxu1 %v4572_v17 }
 0x225   :  { %3947 = vmatprep.subr.bf16.mxu1 %v4573_v48 }
 0x226   :  { %2920 = vmatprep.mubr.bf16.mxu1 %v2167_v61 }
 0x227   :  { %2921 = vmatmul.mubr.bf16.gmra.mxu1 %v2166_v37 }
 0x228   :  { %3948 = vmatpush3.bf16.msra.mxu1 %v4574_v54  ;;  %3012 = vmatprep.mubr.bf16.mxu1 %v2163_v3 }
 0x229   :  { %3949 = vmatprep.subr.bf16.mxu1 %v4575_v21 }
 0x22c   :  { %3950 = vmatpush3.bf16.msra.mxu1 %v4576_v4 }
 0x22d   :  { %3951 = vmatprep.subr.bf16.mxu1 %v4577_v53 }
 0x230   :  { %3952 = vmatpush3.bf16.msra.mxu1 %v4578_v7 }
 0x231   :  { %3953 = vmatprep.subr.bf16.mxu1 %v4579_v43 }
 0x234   :  { %3954 = vmatpush3.bf16.msra.mxu1 %v4580_v26 }
 0x235   :  { %3955 = vmatprep.subr.bf16.mxu1 %v4581_v42 }
 0x238   :  { %3956 = vmatpush3.bf16.msra.mxu1 %v4582_v27 }
 0x239   :  { %3957 = vmatprep.subr.bf16.mxu1 %v4583_v25 }
 0x23c   :  { %3958 = vmatpush3.bf16.msra.mxu1 %v4584_v49 }
 0x23d   :  { %4019 = vmatprep.subr.bf16.mxu1 %v4601_v0 }
 0x23f   :  { %3013 = vmatmul.mubr.bf16.vlgmr.msra.gmra.mxu1 %v2162_v60 }
 0x240   :  { %3020 = vmatprep.mubr.bf16.mxu1 %v2167_v61  ;;  %4020 = vmatpush3.bf16.msra.mxu1 %v4601_v0  ;;  %v2309_v0 = vrot.slane %v2296_v40, %v430_v1 }
 0x241   :  { %4021 = vmatprep.subr.bf16.mxu1 %v4602_v33 }
 0x244   :  { %4022 = vmatpush3.bf16.msra.mxu1 %v4602_v33 }
 0x245   :  { %4023 = vmatprep.subr.bf16.mxu1 %v4603_v34 }
 0x247   :  { %3021 = vmatmul.mubr.bf16.gmra.mxu1 %v2166_v37 }
 0x248   :  { %4024 = vmatpush3.bf16.msra.mxu1 %v4603_v34 }
 0x249   :  { %4025 = vmatprep.subr.bf16.mxu1 %v4604_v35 }
 0x24c   :  { %4026 = vmatpush3.bf16.msra.mxu1 %v4604_v35 }
 0x24d   :  { %4027 = vmatprep.subr.bf16.mxu1 %v4605_v36 }
 0x250   :  { %4028 = vmatpush3.bf16.msra.mxu1 %v4605_v36 }
 0x251   :  { %4029 = vmatprep.subr.bf16.mxu1 %v4606_v38 }
 0x254   :  { %4030 = vmatpush3.bf16.msra.mxu1 %v4606_v38 }
 0x255   :  { %4031 = vmatprep.subr.bf16.mxu1 %v4607_v39 }
 0x258   :  { %4032 = vmatpush3.bf16.msra.mxu1 %v4607_v39 }
 0x259   :  { %4033 = vmatprep.subr.bf16.mxu1 %v4608_v41 }
 0x25c   :  { %4034 = vmatpush3.bf16.msra.mxu1 %v4608_v41 }
 0x25f   :  { %v2859_v44 = vpop.f32.mrf.mxu0 }
 0x260   :  { %v2860_v3 = vadd.f32 %v2859_v44, %v2301_v55 }
 0x261   :  { %v2861_v45 = vpop.f32.mrf.mxu0 }
 0x262   :  { %v2862_v62 = vadd.f32 %v2861_v45, %v2305_v52 }
 0x263   :  { %v2863_v46 = vpop.f32.mrf.mxu0 }
 0x264   :  { %v2864_v2 = vadd.f32 %v2863_v46, %v2301_v55 }
 0x265   :  { %v2865_v50 = vpop.f32.mrf.mxu0 }
 0x266   :  { %v2866_v6 = vadd.f32 %v2865_v50, %v2305_v52 }
 0x267   :  { %v2869_v51 = vpop.f32.mrf.mxu0 }
 0x268   :  { %v2870_v24 = vadd.f32 %v2869_v51, %v2301_v55 }
 0x269   :  { %v2871_v57 = vpop.f32.mrf.mxu0 }
 0x26a   :  { %v2872_v17 = vadd.f32 %v2871_v57, %v2305_v52 }
 0x26b   :  { %v2873_v11 = vpop.f32.mrf.mxu0 }
 0x26c   :  { %v2874_v12 = vadd.f32 %v2873_v11, %v2301_v55 }
 0x26d   :  { %v2875_v13 = vpop.f32.mrf.mxu0 }
 0x26e   :  { %v2876_v54 = vadd.f32 %v2875_v13, %v2305_v52  ;;  %v4613_v13 = vld [vmem:[#allocation11 + $0x18] sm:$0xff]  }
 0x27f   :  { %v3931_v58 = vpop.f32.mrf.mxu0 }
 0x281   :  { %v3932_v43 = vpop.f32.mrf.mxu0 }
 0x282   :  { %v3933_v33 = vadd.f32 %v3932_v43, %v3931_v58 }
 0x283   :  { %v3934_v28 = vpop.f32.mrf.mxu0 }
 0x284   :  { %v2966_v41 = vadd.f32 %v3933_v33, %v2309_v0 }
 0x285   :  { %v3935_v30 = vpop.f32.mrf.mxu0 }
 0x286   :  { %v3936_v35 = vadd.f32 %v3935_v30, %v3934_v28 }
 0x287   :  { %v3937_v31 = vpop.f32.mrf.mxu0 }
 0x288   :  { %v2969_v45 = vadd.f32 %v3936_v35, %v2309_v0 }
 0x289   :  { %v3938_v32 = vpop.f32.mrf.mxu0 }
 0x28a   :  { %v3939_v55 = vadd.f32 %v3938_v32, %v3937_v31 }
 0x28b   :  { %v3940_v38 = vpop.f32.mrf.mxu0 }
 0x28d   :  { %v3941_v51 = vpop.f32.mrf.mxu0 }
 0x2df   :  { %v2912_v56 = vpop.f32.mrf.mxu1 }
 0x2e0   :  { %v2913_v14 = vadd.f32 %v2912_v56, %v2860_v3 }
 0x2e1   :  { %v2914_v59 = vpop.f32.mrf.mxu1 }
 0x2e2   :  { %v2915_v8 = vadd.f32 %v2914_v59, %v2862_v62  ;;  %v3029_v22 = vmax.f32 %v2913_v14, 0.0  ;;  %v3942_v59 = vadd.f32 %v3941_v51, %v3940_v38 }
 0x2e3   :  { %v2916_v5 = vpop.f32.mrf.mxu1 }
 0x2e4   :  { %v2917_v60 = vadd.f32 %v2916_v5, %v2864_v2  ;;  %v3030_v19 = vmax.f32 %v2915_v8, 0.0  ;;  %v2974_v2 = vadd.f32 %v3939_v55, %v2309_v0 }
 0x2e5   :  { %v2918_v16 = vpop.f32.mrf.mxu1 }
 0x2e6   :  { %v2919_v9 = vadd.f32 %v2918_v16, %v2866_v6  ;;  %v3032_v18 = vmax.f32 %v2917_v60, 0.0  ;;  %v2977_v6 = vadd.f32 %v3942_v59, %v2309_v0 }
 0x2e7   :  { %v2922_v20 = vpop.f32.mrf.mxu1 }
 0x2e8   :  { %v3033_v23 = vmax.f32 %v2919_v9, 0.0  ;;  %v3041_v15 = vpack.c.bf16 %v3032_v18, %v3029_v22  ;;  %v2923_v4 = vadd.f32 %v2922_v20, %v2870_v24  ;;  %v4609_v18 = vld [vmem:[#allocation11 + $0x38] sm:$0xff]   ;;  %v4610_v20 = vld [vmem:[#allocation11 + $0x30] sm:$0xff]  }
 0x2e9   :  { %v2924_v47 = vpop.f32.mrf.mxu1  ;;  %4039 = vmatprep.subr.bf16.mxu0 %v4609_v18  ;;  %v4614_v22 = vld [vmem:[#allocation11 + $0x10] sm:$0xff]  }
 0x2ea   :  { %v3042_v48 = vpack.c.bf16 %v3033_v23, %v3030_v19  ;;  %v2925_v37 = vadd.f32 %v2924_v47, %v2872_v17  ;;  %v3035_v25 = vmax.f32 %v2923_v4, 0.0  ;;  %v4611_v19 = vld [vmem:[#allocation11 + $0x28] sm:$0xff]   ;;  %v4612_v23 = vld [vmem:[#allocation11 + $0x20] sm:$0xff]  }
 0x2eb   :  { %v2926_v61 = vpop.f32.mrf.mxu1  ;;  %v4615_v47 = vld [vmem:[#allocation11 + $0x8] sm:$0xff]   ;;  %v4616_v17 = vld [vmem:[#allocation11] sm:$0xff]  }
 0x2ec   :  { %v2927_v21 = vadd.f32 %v2926_v61, %v2874_v12  ;;  %3278 = vmatprep.mubr.bf16.mxu0 %v3042_v48  ;;  %v3036_v42 = vmax.f32 %v2925_v37, 0.0 }
 0x2ed   :  { %v2928_v53 = vpop.f32.mrf.mxu1  ;;  %3279 = vmatmul.mubr.bf16.vlgmr.msra.gmra.mxu0 %v3041_v15 }
 0x2ee   :  { %v2929_v7 = vadd.f32 %v2928_v53, %v2876_v54  ;;  %v3038_v26 = vmax.f32 %v2927_v21, 0.0  ;;  %4040 = vmatpush3.bf16.msra.mxu0 %v4609_v18 }
 0x2ef   :  { %4041 = vmatprep.subr.bf16.mxu0 %v4610_v20 }
 0x2f0   :  { %v3039_v27 = vmax.f32 %v2929_v7, 0.0  ;;  %v3044_v29 = vpack.c.bf16 %v3038_v26, %v3035_v25  ;;  %v3862_v7 = vld [vmem:[%s4980_s6] ss:$0 sm:$0xff] }
 0x2f2   :  { %v3045_v49 = vpack.c.bf16 %v3039_v27, %v3036_v42  ;;  %4042 = vmatpush3.bf16.msra.mxu0 %v4610_v20 }
 0x2f3   :  { %4043 = vmatprep.subr.bf16.mxu0 %v4611_v19 }
 0x2f4   :  { %3286 = vmatprep.mubr.bf16.mxu0 %v3045_v49 }
 0x2f5   :  { %3287 = vmatmul.mubr.bf16.gmra.mxu0 %v3044_v29 }
 0x2f6   :  { %4044 = vmatpush3.bf16.msra.mxu0 %v4611_v19 }
 0x2f7   :  { %4045 = vmatprep.subr.bf16.mxu0 %v4612_v23 }
 0x2fa   :  { %4046 = vmatpush3.bf16.msra.mxu0 %v4612_v23 }
 0x2fb   :  { %4047 = vmatprep.subr.bf16.mxu0 %v4613_v13 }
 0x2fe   :  { %4048 = vmatpush3.bf16.msra.mxu0 %v4613_v13 }
 0x2ff   :  { %v3959_v63 = vpop.f32.mrf.mxu1  ;;  %4049 = vmatprep.subr.bf16.mxu0 %v4614_v22 }
 0x301   :  { %v3960_v34 = vpop.f32.mrf.mxu1 }
 0x302   :  { %v3961_v36 = vadd.f32 %v3960_v34, %v3959_v63  ;;  %4050 = vmatpush3.bf16.msra.mxu0 %v4614_v22 }
 0x303   :  { %v3962_v39 = vpop.f32.mrf.mxu1  ;;  %4051 = vmatprep.subr.bf16.mxu0 %v4615_v47 }
 0x304   :  { %v3015_v46 = vadd.f32 %v3961_v36, %v2966_v41 }
 0x305   :  { %v3963_v44 = vpop.f32.mrf.mxu1 }
 0x306   :  { %v3964_v50 = vadd.f32 %v3963_v44, %v3962_v39  ;;  %v3031_v62 = vmax.f32 %v3015_v46, 0.0  ;;  %4052 = vmatpush3.bf16.msra.mxu0 %v4615_v47  ;;  %v3887_v44 = vld [vmem:[%s4982_s8] ss:$0 sm:$0xff] }
 0x307   :  { %v3965_v52 = vpop.f32.mrf.mxu1  ;;  %4053 = vmatprep.subr.bf16.mxu0 %v4616_v17 }
 0x308   :  { %v3018_v56 = vadd.f32 %v3964_v50, %v2969_v45 }
 0x309   :  { %v3966_v57 = vpop.f32.mrf.mxu1 }
 0x30a   :  { %v3034_v10 = vmax.f32 %v3018_v56, 0.0  ;;  %v3967_v1 = vadd.f32 %v3966_v57, %v3965_v52  ;;  %4054 = vmatpush3.bf16.msra.mxu0 %v4616_v17 }
 0x30b   :  { %v3968_v40 = vpop.f32.mrf.mxu1 }
 0x30c   :  { %v3043_v3 = vpack.c.bf16 %v3034_v10, %v3031_v62  ;;  %v3023_v8 = vadd.f32 %v3967_v1, %v2974_v2 }
 0x30d   :  { %v3969_v5 = vpop.f32.mrf.mxu1 }
 0x30e   :  { %v3970_v60 = vadd.f32 %v3969_v5, %v3968_v40  ;;  %4035 = vmatprep.mubr.bf16.mxu1 %v3043_v3  ;;  %v3037_v14 = vmax.f32 %v3023_v8, 0.0 }
 0x310   :  { %v3026_v11 = vadd.f32 %v3970_v60, %v2977_v6 }
 0x312   :  { %v3040_v16 = vmax.f32 %v3026_v11, 0.0 }
 0x314   :  { %v3046_v9 = vpack.c.bf16 %v3040_v16, %v3037_v14 }
 0x316   :  { %4036 = vmatmul.mubr.bf16.vlgmr.msra.gmra.mxu1 %v3046_v9 }
 0x3ad   :  { %v3987_v12 = vpop.f32.mrf.mxu0 }
 0x3af   :  { %v3988_v48 = vpop.f32.mrf.mxu0 }
 0x3b0   :  { %v3989_v21 = vadd.f32 %v3988_v48, %v3987_v12 }
 0x3b1   :  { %v3990_v24 = vpop.f32.mrf.mxu0 }
 0x3b2   :  { %v3281_v27 = vadd.f32 %v3989_v21, %v3862_v7 }
 0x3b3   :  { %v3991_v58 = vpop.f32.mrf.mxu0 }
 0x3b4   :  { %v3992_v26 = vadd.f32 %v3991_v58, %v3990_v24 }
 0x3b5   :  { %v3993_v15 = vpop.f32.mrf.mxu0 }
 0x3b6   :  { %v3284_v31 = vadd.f32 %v3992_v26, %v3862_v7 }
 0x3b7   :  { %v3994_v61 = vpop.f32.mrf.mxu0 }
 0x3b8   :  { %v3995_v53 = vadd.f32 %v3994_v61, %v3993_v15 }
 0x3b9   :  { %v3996_v54 = vpop.f32.mrf.mxu0 }
 0x3ba   :  { %v3289_v49 = vadd.f32 %v3995_v53, %v3862_v7 }
 0x3bb   :  { %v3997_v37 = vpop.f32.mrf.mxu0 }
 0x3bc   :  { %v3998_v4 = vadd.f32 %v3997_v37, %v3996_v54 }
 0x3be   :  { %v3292_v25 = vadd.f32 %v3998_v4, %v3862_v7 }
 0x3d6   :  { %v4037_v43 = vpop.f32.mrf.mxu1 }
 0x3d7   :  { %v3338_v32 = vadd.f32 %v4037_v43, %v3289_v49 }
 0x3d8   :  { %v3329_v42 = vpop.f32.mrf.mxu1 }
 0x3d9   :  { %v3330_v29 = vadd.f32 %v3329_v42, %v3281_v27  ;;  %v3346_v36 = vmax.f32 %v3338_v32, 0.0 }
 0x3da   :  { %v4038_v28 = vpop.f32.mrf.mxu1 }
 0x3db   :  { %v3341_v30 = vadd.f32 %v4038_v28, %v3292_v25  ;;  %v3344_v34 = vmax.f32 %v3330_v29, 0.0 }
 0x3dc   :  { %v3332_v63 = vpop.f32.mrf.mxu1 }
 0x3dd   :  { %v3333_v0 = vadd.f32 %v3332_v63, %v3284_v31  ;;  %v3347_v33 = vmax.f32 %v3341_v30, 0.0 }
 0x3df   :  { %v3345_v35 = vmax.f32 %v3333_v0, 0.0  ;;  %v3349_v39 = vpack.c.bf16 %v3347_v33, %v3346_v36 }
 0x3e1   :  { %v3348_v38 = vpack.c.bf16 %v3345_v35, %v3344_v34 }
 0x3e3   :  { %4055 = vmatprep.mubr.bf16.mxu0 %v3348_v38 }
 0x3e4   :  { %4056 = vmatmul.mubr.bf16.vlgmr.msra.gmra.mxu0 %v3349_v39 }
 0x4a4   :  { %v4057_v41 = vpop.f32.mrf.mxu0 }
 0x4a5   :  { %v3464_v50 = vadd.f32 %v4057_v41, %v3887_v44 }
 0x4a6   :  { %v3455_v45 = vpop.f32.mrf.mxu0 }
 0x4a7   :  { %v3456_v55 = vadd.f32 %v3887_v44, %v3455_v45 }
 0x4a8   :  { %v4058_v46 = vpop.f32.mrf.mxu0 }
 0x4a9   :  { %v3467_v51 = vadd.f32 %v4058_v46, %v3887_v44 }
 0x4aa   :  { %v3458_v52 = vpop.f32.mrf.mxu0 }
 0x4ab   :  { %v3912_v56 = vpack.c.bf16 %v3467_v51, %v3464_v50  ;;  %v3459_v57 = vadd.f32 %v3887_v44, %v3458_v52 }
 0x4ad   :  { %3914 = vst [vmem:[#allocation13 + $0x8] sm:$0xff] %v3912_v56   ;;  %v3907_v59 = vpack.c.bf16 %v3459_v57, %v3456_v55 }
 0x4af   :  { %3908 = vst [vmem:[#allocation13] sm:$0xff] %v3907_v59  }
 0x4b0   :  { %4748 = shalt.err (!%p4745_p6)
}
 0x4b1   :  { %3501 = dma.vmem_to_hbm [thread:$0]  %s3496_s24, 256, %s4983_s9, [#allocation4], %s4775_s26, %s4775_s26, %s4778_s0  }
 0x4b2   :  { %4765 = dma.done.wait [#allocation4], 256  }
 0x4b3   :  { %4766 = vsyncadd [#allocation4], 4294967040 }
 0x4b4   :  { %3505 = vsyncpa [#allocation3], 1 }
 0x4b5   :  { %3506 = vsyncpa [#allocation6], 1 }
 0x4b6   :  { %3507 = vsyncpa [#allocation9], 1 }
 0x4b7   :  { %3508 = vsyncpa [#allocation12], 1 }
 0x4b8   :  { %3509 = vsyncpa [#allocation4], 1 }

</bundles_post_ra>
